<compile_context>
chip_gen: v7x
topology: tpu7x:2x2x1
jax: 0.10.0
libtpu: 0.0.40
codegen_flags: <defaults>
</compile_context>

<pallas_src>
import functools

import jax
import jax.numpy as jnp
from jax.experimental import pallas as pl
from jax.experimental.pallas import tpu as pltpu


_VMEM_LIMIT = 32 * 1024 * 1024     # safe on v5e/v6e/v7x (<= physical VMEM)
_TM_MAX = 512                      # max rows (batch*spatial) per grid step
_X_BLOCK_BUDGET = 4 * 1024 * 1024  # bf16 bytes budget for one activation block


def _pad_to(v, m):
    return ((v + m - 1) // m) * m


def _pick_tm(m_total, k_dim):
    """Largest row tile (multiple of 8, <= _TM_MAX, VMEM-bounded) dividing m_total."""
    cap = max(8, min(_TM_MAX, (_X_BLOCK_BUDGET // (2 * k_dim)) // 8 * 8))
    for tm in (512, 256, 128, 64, 32, 16, 8):
        if tm <= cap and m_total % tm == 0:
            return tm
    return m_total   # fallback (not reached for DCGAN geometries)


# ----------------------------------------------------------------------------
# Pallas kernel: one dense conv-as-matmul tile (+ optional fused epilogues)
# ----------------------------------------------------------------------------
def _conv_matmul_kernel(x_ref, w_ref, y_ref, stats_ref=None, *, act):
    """x_ref: (tm, K) bf16 patches, w_ref: (K, tco) bf16 packed weights.

    y_ref:     (tm, tco) bf16 conv output (optionally LeakyReLU'ed).
    stats_ref: (1, 2, tco) f32 per-block BN partials: row0 = sum, row1 = sumsq.
    """
    acc = jnp.dot(x_ref[...], w_ref[...], preferred_element_type=jnp.float32)

    if act == "leaky_relu":
        # single select: max(x, 0.2x) == LeakyReLU(0.2)
        acc = jnp.maximum(acc, 0.2 * acc)

    y_ref[...] = acc.astype(y_ref.dtype)

    if stats_ref is not None:
        stats_ref[0, 0:1, :] = jnp.sum(acc, axis=0, keepdims=True)
        stats_ref[0, 1:2, :] = jnp.sum(acc * acc, axis=0, keepdims=True)


# ----------------------------------------------------------------------------
# Conv layer wrapper
# ----------------------------------------------------------------------------
def conv_block(patches, w_packed, *, act="none", with_stats=False):
    """One 4x4 / stride-2 / pad-1 bias-free conv as a dense matmul.

    patches:  (M, K) bf16, M = batch*Ho*Wo, K = 16*Cin (true Cin, unpadded)
    w_packed: (K, Cout_pad) bf16, Cout_pad a multiple of 128
    Returns (M, Cout_pad) bf16, and when with_stats additionally the per-M-tile
    partial [sum; sumsq] of shape (m_tiles, 2, Cout_pad) in f32.
    """
    m_total, k = patches.shape
    kw, cop = w_packed.shape
    assert kw == k and cop % 128 == 0

    tco = 256 if cop % 256 == 0 else 128     # full MXU width on v6e/v7x
    tm = _pick_tm(m_total, k)
    n_co, n_m = cop // tco, m_total // tm

    kern = functools.partial(_conv_matmul_kernel, act=act)
    y_shape = jax.ShapeDtypeStruct((m_total, cop), jnp.bfloat16)
    y_spec = pl.BlockSpec((tm, tco), lambda i, j: (j, i))
    if with_stats:
        out_shape = (y_shape, jax.ShapeDtypeStruct((n_m, 2, cop), jnp.float32))
        out_specs = (y_spec, pl.BlockSpec((1, 2, tco), lambda i, j: (j, 0, i)))
    else:
        out_shape = y_shape
        out_specs = y_spec

    return pl.pallas_call(
        kern,
        out_shape=out_shape,
        grid_spec=pltpu.PrefetchScalarGridSpec(
            num_scalar_prefetch=0,
            # Cout tiles OUTER, M tiles inner: the weight tile's block index is
            # constant across the inner axis -> it stays VMEM-resident instead
            # of being re-DMA'd for every image / M tile.
            grid=(n_co, n_m),
            in_specs=[
                pl.BlockSpec((tm, k), lambda i, j: (j, 0)),
                pl.BlockSpec((k, tco), lambda i, j: (0, i)),
            ],
            out_specs=out_specs,
        ),
        compiler_params=pltpu.CompilerParams(
            dimension_semantics=("parallel", "parallel"),
            vmem_limit_bytes=_VMEM_LIMIT),
    )(patches, w_packed)


# ----------------------------------------------------------------------------
# Plain-JAX glue: im2col (fused by XLA with any preceding BN affine + leaky)
# ----------------------------------------------------------------------------
def make_patches(x_nhwc):
    """4x4 / stride-2 / pad-1 im2col: (N,H,W,C) -> (N*Ho*Wo, 16*C) bf16.

    K ordering is (ky, kx, ci), matching _pack_conv_weight.  XLA fuses this
    with the per-channel BN affine + LeakyReLU that precedes it, so the raw
    activation is read once and the patches matrix written once per layer.
    """
    n, h, w, c = x_nhwc.shape
    ho, wo = h // 2, w // 2
    xp = jnp.pad(x_nhwc, ((0, 0), (1, 1), (1, 1), (0, 0)))
    cols = []
    for ky in range(4):
        for kx in range(4):
            cols.append(xp[:, ky:ky + 2 * ho - 1:2, kx:kx + 2 * wo - 1:2, :])
    p = jnp.concatenate(cols, axis=-1)            # (N, Ho, Wo, 16*C)
    return p.reshape(n * ho * wo, 16 * c)


# ----------------------------------------------------------------------------
# Parameters (PyTorch-layout) + one-time packing
# ----------------------------------------------------------------------------
def init_params(key, nc, ndf):
    ks = jax.random.split(key, 5)

    def w(k, o, i):
        return 0.02 * jax.random.normal(k, (o, i, 4, 4), jnp.float32)

    return {
        "w1": w(ks[0], ndf, nc),
        "w2": w(ks[1], ndf * 2, ndf),
        "g2": jnp.ones((ndf * 2,), jnp.float32),
        "b2": jnp.zeros((ndf * 2,), jnp.float32),
        "w3": w(ks[2], ndf * 4, ndf * 2),
        "g3": jnp.ones((ndf * 4,), jnp.float32),
        "b3": jnp.zeros((ndf * 4,), jnp.float32),
        "w4": w(ks[3], ndf * 8, ndf * 4),
        "g4": jnp.ones((ndf * 8,), jnp.float32),
        "b4": jnp.zeros((ndf * 8,), jnp.float32),
        "w5": w(ks[4], 1, ndf * 8),
    }


def _pack_conv_weight(w_oihw, cout_pad):
    """OIHW 4x4 weights -> (16*Cin, Cout_pad) bf16, K order (ky, kx, ci)."""
    co, ci, kh, kw = w_oihw.shape
    assert kh == 4 and kw == 4
    wt = jnp.transpose(w_oihw, (2, 3, 1, 0)).reshape(kh * kw * ci, co)
    wt = jnp.pad(wt, ((0, 0), (0, cout_pad - co)))
    return wt.astype(jnp.bfloat16)


def _pack_final_weight(w_oihw):
    co, ci, kh, kw = w_oihw.shape                 # (1, 8*ndf, 4, 4)
    wt = jnp.transpose(w_oihw, (2, 3, 1, 0)).reshape(kh * kw * ci, co)
    return wt.astype(jnp.float32)


def pack_params(params):
    """One-time weight repack (done outside jit).  Only Cout is padded."""
    return {
        "w1": _pack_conv_weight(params["w1"], _pad_to(params["w1"].shape[0], 128)),
        "w2": _pack_conv_weight(params["w2"], _pad_to(params["w2"].shape[0], 128)),
        "g2": params["g2"], "b2": params["b2"],
        "w3": _pack_conv_weight(params["w3"], _pad_to(params["w3"].shape[0], 128)),
        "g3": params["g3"], "b3": params["b3"],
        "w4": _pack_conv_weight(params["w4"], _pad_to(params["w4"].shape[0], 128)),
        "g4": params["g4"], "b4": params["b4"],
        "w5": _pack_final_weight(params["w5"]),
    }


# ----------------------------------------------------------------------------
# Discriminator forward
# ----------------------------------------------------------------------------
def discriminator_forward(packed, x_nchw):
    n = x_nchw.shape[0]
    x = jnp.transpose(x_nchw, (0, 2, 3, 1)).astype(jnp.bfloat16)   # NCHW -> NHWC
    h, w = x.shape[1], x.shape[2]

    # conv1 + LeakyReLU (fused into the matmul epilogue)
    p = make_patches(x)
    h, w = h // 2, w // 2
    y = conv_block(p, packed["w1"], act="leaky_relu")      # (n*h*w, c1_pad)
    c1 = packed["w2"].shape[0] // 16                       # true ndf
    act = y[:, :c1].reshape(n, h, w, c1)

    # conv{2,3,4} with fused BN partial stats; the BN affine + LeakyReLU is
    # applied below in plain JAX and fuses into the next layer's patch build
    # (or the final GEMV input) -> no standalone BN pass over HBM.
    for wk, gk, bk in (("w2", "g2", "b2"), ("w3", "g3", "b3"), ("w4", "g4", "b4")):
        p = make_patches(act)
        h, w = h // 2, w // 2
        y, stats = conv_block(p, packed[wk], with_stats=True)
        gamma, beta = packed[gk], packed[bk]
        cout = gamma.shape[0]
        cnt = n * h * w
        s = jnp.sum(stats[:, 0, :cout], axis=0)
        q = jnp.sum(stats[:, 1, :cout], axis=0)
        mean = s / cnt
        var = jnp.maximum(q / cnt - mean * mean, 0.0)       # biased var (PyTorch BN)
        scale = gamma / jnp.sqrt(var + 1e-5)
        shift = beta - mean * scale
        z = y[:, :cout].astype(jnp.float32) * scale[None, :] + shift[None, :]
        act = jnp.maximum(z, 0.2 * z).astype(jnp.bfloat16).reshape(n, h, w, cout)

    # Final 4x4 valid conv to 1 channel + Sigmoid: a tiny GEMV -> plain JAX
    # (a single-lane Pallas output would be pure pipeline overhead).
    assert h == 4 and w == 4, "DCGAN discriminator expects 64x64 inputs"
    flat = act.reshape(n, h * w * act.shape[-1]).astype(jnp.float32)
    logits = flat @ packed["w5"]
    return jax.nn.sigmoid(logits).reshape(n, 1, 1, 1)       # (N, 1, 1, 1)


if __name__ == "__main__":
    NC, ndf = 3, 8
    key = jax.random.PRNGKey(0)
    kx, kp = jax.random.split(key)
    # DCGAN discriminator geometry requires 64x64 inputs for the final 4x4 conv.
    x = jax.random.normal(kx, (2, NC, 64, 64), jnp.float32)
    params = init_params(kp, NC, ndf)
    packed = pack_params(params)          # one-time weight repack, outside jit

    fwd = jax.jit(discriminator_forward)
    out = jax.block_until_ready(fwd(packed, x))

    assert out.shape == (2, 1, 1, 1), out.shape
    assert bool(jnp.all(jnp.isfinite(out)))
    assert bool(jnp.all((out >= 0.0) & (out <= 1.0)))
    print("KERNEL_OK")
</pallas_src>

<mosaic_0001>
module attributes {stable_mosaic.version = 11 : i64} {
  func.func @_conv_matmul_kernel(%arg0: i32, %arg1: i32, %arg2: memref<512x48xbf16, #tpu.memory_space<vmem>>, %arg3: memref<48x128xbf16, #tpu.memory_space<vmem>>, %arg4: memref<512x128xbf16, #tpu.memory_space<vmem>>) attributes {dimension_semantics = [#tpu.dimension_semantics<parallel>, #tpu.dimension_semantics<parallel>], iteration_bounds = array<i64: 1, 4>, scalar_prefetch = 0 : i64, scratch_operands = 0 : i64, tpu.core_type = #tpu.core_type<tc>, window_params = [{transform_indices = @transform_0, window_bounds = array<i64: 512, 48>}, {transform_indices = @transform_1, window_bounds = array<i64: 48, 128>}, {transform_indices = @transform_2, window_bounds = array<i64: 512, 128>}]} {
    %c0 = arith.constant 0 : index
    %c0_0 = arith.constant 0 : index
    %0 = vector.load %arg2[%c0, %c0_0] : memref<512x48xbf16, #tpu.memory_space<vmem>>, vector<512x48xbf16>
    %c0_1 = arith.constant 0 : index
    %c0_2 = arith.constant 0 : index
    %1 = vector.load %arg3[%c0_1, %c0_2] : memref<48x128xbf16, #tpu.memory_space<vmem>>, vector<48x128xbf16>
    %cst = arith.constant dense<0.000000e+00> : vector<512x128xf32>
    %2 = tpu.matmul %0, %1, %cst {dimension_numbers = #tpu.dot_dimension_numbers<[1], [0], [0], [1], [0, 0, 1, 1], [], []>} : vector<512x48xbf16>, vector<48x128xbf16>, vector<512x128xf32> -> vector<512x128xf32>
    %cst_3 = arith.constant 2.000000e-01 : f32
    %3 = vector.broadcast %cst_3 : f32 to vector<512x128xf32>
    %4 = arith.mulf %3, %2 : vector<512x128xf32>
    %5 = arith.maximumf %2, %4 : vector<512x128xf32>
    %6 = arith.truncf %5 : vector<512x128xf32> to vector<512x128xbf16>
    %c0_4 = arith.constant 0 : index
    %c0_5 = arith.constant 0 : index
    %7 = vector.load %arg4[%c0_4, %c0_5] : memref<512x128xbf16, #tpu.memory_space<vmem>>, vector<512x128xbf16>
    tpu.vector_store %arg4[%c0_4, %c0_5], %6 {strides = array<i32>} : memref<512x128xbf16, #tpu.memory_space<vmem>>, vector<512x128xbf16>,
    return
  }
  func.func @transform_0(%arg0: i32, %arg1: i32) -> (i32, i32) {
    %c0_i32 = arith.constant 0 : i32
    %c0_i32_0 = arith.constant 0 : i32
    return %arg1, %c0_i32 : i32, i32
  }
  func.func @transform_1(%arg0: i32, %arg1: i32) -> (i32, i32) {
    %c0_i32 = arith.constant 0 : i32
    %c0_i32_0 = arith.constant 0 : i32
    return %c0_i32, %arg0 : i32, i32
  }
  func.func @transform_2(%arg0: i32, %arg1: i32) -> (i32, i32) {
    %c0_i32 = arith.constant 0 : i32
    return %arg1, %arg0 : i32, i32
  }
}

module attributes {stable_mosaic.version = 11 : i64} {
  func.func @_conv_matmul_kernel(%arg0: i32, %arg1: i32, %arg2: memref<512x128xbf16, #tpu.memory_space<vmem>>, %arg3: memref<128x128xbf16, #tpu.memory_space<vmem>>, %arg4: memref<512x128xbf16, #tpu.memory_space<vmem>>, %arg5: memref<1x2x128xf32, #tpu.memory_space<vmem>>) attributes {dimension_semantics = [#tpu.dimension_semantics<parallel>, #tpu.dimension_semantics<parallel>], iteration_bounds = array<i64: 1, 1>, scalar_prefetch = 0 : i64, scratch_operands = 0 : i64, tpu.core_type = #tpu.core_type<tc>, window_params = [{transform_indices = @transform_0, window_bounds = array<i64: 512, 128>}, {transform_indices = @transform_1, window_bounds = array<i64: 128, 128>}, {transform_indices = @transform_2, window_bounds = array<i64: 512, 128>}, {transform_indices = @transform_3, window_bounds = array<i64: 1, 2, 128>}]} {
    %c0 = arith.constant 0 : index
    %c0_0 = arith.constant 0 : index
    %0 = vector.load %arg2[%c0, %c0_0] : memref<512x128xbf16, #tpu.memory_space<vmem>>, vector<512x128xbf16>
    %c0_1 = arith.constant 0 : index
    %c0_2 = arith.constant 0 : index
    %1 = vector.load %arg3[%c0_1, %c0_2] : memref<128x128xbf16, #tpu.memory_space<vmem>>, vector<128x128xbf16>
    %cst = arith.constant dense<0.000000e+00> : vector<512x128xf32>
    %2 = tpu.matmul %0, %1, %cst {dimension_numbers = #tpu.dot_dimension_numbers<[1], [0], [0], [1], [0, 0, 1, 1], [], []>} : vector<512x128xbf16>, vector<128x128xbf16>, vector<512x128xf32> -> vector<512x128xf32>
    %3 = arith.truncf %2 : vector<512x128xf32> to vector<512x128xbf16>
    %c0_3 = arith.constant 0 : index
    %c0_4 = arith.constant 0 : index
    %4 = vector.load %arg4[%c0_3, %c0_4] : memref<512x128xbf16, #tpu.memory_space<vmem>>, vector<512x128xbf16>
    tpu.vector_store %arg4[%c0_3, %c0_4], %3 {strides = array<i32>} : memref<512x128xbf16, #tpu.memory_space<vmem>>, vector<512x128xbf16>,
    %cst_5 = arith.constant dense<0.000000e+00> : vector<128xf32>
    %5 = vector.multi_reduction <add>, %2, %cst_5 [0] : vector<512x128xf32> to vector<128xf32>
    %6 = vector.shape_cast %5 : vector<128xf32> to vector<1x128xf32>
    %c0_6 = arith.constant 0 : index
    %c0_7 = arith.constant 0 : index
    %c0_8 = arith.constant 0 : index
    %7 = vector.load %arg5[%c0_6, %c0_7, %c0_8] : memref<1x2x128xf32, #tpu.memory_space<vmem>>, vector<1x1x128xf32>
    %8 = vector.shape_cast %7 : vector<1x1x128xf32> to vector<1x128xf32>
    %9 = vector.shape_cast %6 : vector<1x128xf32> to vector<1x1x128xf32>
    tpu.vector_store %arg5[%c0_6, %c0_7, %c0_8], %9 {strides = array<i32>} : memref<1x2x128xf32, #tpu.memory_space<vmem>>, vector<1x1x128xf32>,
    %10 = arith.mulf %2, %2 : vector<512x128xf32>
    %cst_9 = arith.constant dense<0.000000e+00> : vector<128xf32>
    %11 = vector.multi_reduction <add>, %10, %cst_9 [0] : vector<512x128xf32> to vector<128xf32>
    %12 = vector.shape_cast %11 : vector<128xf32> to vector<1x128xf32>
    %c0_10 = arith.constant 0 : index
    %c1 = arith.constant 1 : index
    %c0_11 = arith.constant 0 : index
    %13 = vector.load %arg5[%c0_10, %c1, %c0_11] : memref<1x2x128xf32, #tpu.memory_space<vmem>>, vector<1x1x128xf32>
    %14 = vector.shape_cast %13 : vector<1x1x128xf32> to vector<1x128xf32>
    %15 = vector.shape_cast %12 : vector<1x128xf32> to vector<1x1x128xf32>
    tpu.vector_store %arg5[%c0_10, %c1, %c0_11], %15 {strides = array<i32>} : memref<1x2x128xf32, #tpu.memory_space<vmem>>, vector<1x1x128xf32>,
    return
  }
  func.func @transform_0(%arg0: i32, %arg1: i32) -> (i32, i32) {
    %c0_i32 = arith.constant 0 : i32
    %c0_i32_0 = arith.constant 0 : i32
    return %arg1, %c0_i32 : i32, i32
  }
  func.func @transform_1(%arg0: i32, %arg1: i32) -> (i32, i32) {
    %c0_i32 = arith.constant 0 : i32
    %c0_i32_0 = arith.constant 0 : i32
    return %c0_i32, %arg0 : i32, i32
  }
  func.func @transform_2(%arg0: i32, %arg1: i32) -> (i32, i32) {
    %c0_i32 = arith.constant 0 : i32
    return %arg1, %arg0 : i32, i32
  }
  func.func @transform_3(%arg0: i32, %arg1: i32) -> (i32, i32, i32) {
    %c0_i32 = arith.constant 0 : i32
    %c0_i32_0 = arith.constant 0 : i32
    return %arg1, %c0_i32, %arg0 : i32, i32, i32
  }
}

module attributes {stable_mosaic.version = 11 : i64} {
  func.func @_conv_matmul_kernel(%arg0: i32, %arg1: i32, %arg2: memref<128x256xbf16, #tpu.memory_space<vmem>>, %arg3: memref<256x128xbf16, #tpu.memory_space<vmem>>, %arg4: memref<128x128xbf16, #tpu.memory_space<vmem>>, %arg5: memref<1x2x128xf32, #tpu.memory_space<vmem>>) attributes {dimension_semantics = [#tpu.dimension_semantics<parallel>, #tpu.dimension_semantics<parallel>], iteration_bounds = array<i64: 1, 1>, scalar_prefetch = 0 : i64, scratch_operands = 0 : i64, tpu.core_type = #tpu.core_type<tc>, window_params = [{transform_indices = @transform_0, window_bounds = array<i64: 128, 256>}, {transform_indices = @transform_1, window_bounds = array<i64: 256, 128>}, {transform_indices = @transform_2, window_bounds = array<i64: 128, 128>}, {transform_indices = @transform_3, window_bounds = array<i64: 1, 2, 128>}]} {
    %c0 = arith.constant 0 : index
    %c0_0 = arith.constant 0 : index
    %0 = vector.load %arg2[%c0, %c0_0] : memref<128x256xbf16, #tpu.memory_space<vmem>>, vector<128x256xbf16>
    %c0_1 = arith.constant 0 : index
    %c0_2 = arith.constant 0 : index
    %1 = vector.load %arg3[%c0_1, %c0_2] : memref<256x128xbf16, #tpu.memory_space<vmem>>, vector<256x128xbf16>
    %cst = arith.constant dense<0.000000e+00> : vector<128x128xf32>
    %2 = tpu.matmul %0, %1, %cst {dimension_numbers = #tpu.dot_dimension_numbers<[1], [0], [0], [1], [0, 0, 1, 1], [], []>} : vector<128x256xbf16>, vector<256x128xbf16>, vector<128x128xf32> -> vector<128x128xf32>
    %3 = arith.truncf %2 : vector<128x128xf32> to vector<128x128xbf16>
    %c0_3 = arith.constant 0 : index
    %c0_4 = arith.constant 0 : index
    %4 = vector.load %arg4[%c0_3, %c0_4] : memref<128x128xbf16, #tpu.memory_space<vmem>>, vector<128x128xbf16>
    tpu.vector_store %arg4[%c0_3, %c0_4], %3 {strides = array<i32>} : memref<128x128xbf16, #tpu.memory_space<vmem>>, vector<128x128xbf16>,
    %cst_5 = arith.constant dense<0.000000e+00> : vector<128xf32>
    %5 = vector.multi_reduction <add>, %2, %cst_5 [0] : vector<128x128xf32> to vector<128xf32>
    %6 = vector.shape_cast %5 : vector<128xf32> to vector<1x128xf32>
    %c0_6 = arith.constant 0 : index
    %c0_7 = arith.constant 0 : index
    %c0_8 = arith.constant 0 : index
    %7 = vector.load %arg5[%c0_6, %c0_7, %c0_8] : memref<1x2x128xf32, #tpu.memory_space<vmem>>, vector<1x1x128xf32>
    %8 = vector.shape_cast %7 : vector<1x1x128xf32> to vector<1x128xf32>
    %9 = vector.shape_cast %6 : vector<1x128xf32> to vector<1x1x128xf32>
    tpu.vector_store %arg5[%c0_6, %c0_7, %c0_8], %9 {strides = array<i32>} : memref<1x2x128xf32, #tpu.memory_space<vmem>>, vector<1x1x128xf32>,
    %10 = arith.mulf %2, %2 : vector<128x128xf32>
    %cst_9 = arith.constant dense<0.000000e+00> : vector<128xf32>
    %11 = vector.multi_reduction <add>, %10, %cst_9 [0] : vector<128x128xf32> to vector<128xf32>
    %12 = vector.shape_cast %11 : vector<128xf32> to vector<1x128xf32>
    %c0_10 = arith.constant 0 : index
    %c1 = arith.constant 1 : index
    %c0_11 = arith.constant 0 : index
    %13 = vector.load %arg5[%c0_10, %c1, %c0_11] : memref<1x2x128xf32, #tpu.memory_space<vmem>>, vector<1x1x128xf32>
    %14 = vector.shape_cast %13 : vector<1x1x128xf32> to vector<1x128xf32>
    %15 = vector.shape_cast %12 : vector<1x128xf32> to vector<1x1x128xf32>
    tpu.vector_store %arg5[%c0_10, %c1, %c0_11], %15 {strides = array<i32>} : memref<1x2x128xf32, #tpu.memory_space<vmem>>, vector<1x1x128xf32>,
    return
  }
  func.func @transform_0(%arg0: i32, %arg1: i32) -> (i32, i32) {
    %c0_i32 = arith.constant 0 : i32
    %c0_i32_0 = arith.constant 0 : i32
    return %arg1, %c0_i32 : i32, i32
  }
  func.func @transform_1(%arg0: i32, %arg1: i32) -> (i32, i32) {
    %c0_i32 = arith.constant 0 : i32
    %c0_i32_0 = arith.constant 0 : i32
    return %c0_i32, %arg0 : i32, i32
  }
  func.func @transform_2(%arg0: i32, %arg1: i32) -> (i32, i32) {
    %c0_i32 = arith.constant 0 : i32
    return %arg1, %arg0 : i32, i32
  }
  func.func @transform_3(%arg0: i32, %arg1: i32) -> (i32, i32, i32) {
    %c0_i32 = arith.constant 0 : i32
    %c0_i32_0 = arith.constant 0 : i32
    return %arg1, %c0_i32, %arg0 : i32, i32, i32
  }
}

module attributes {stable_mosaic.version = 11 : i64} {
  func.func @_conv_matmul_kernel(%arg0: i32, %arg1: i32, %arg2: memref<32x512xbf16, #tpu.memory_space<vmem>>, %arg3: memref<512x128xbf16, #tpu.memory_space<vmem>>, %arg4: memref<32x128xbf16, #tpu.memory_space<vmem>>, %arg5: memref<1x2x128xf32, #tpu.memory_space<vmem>>) attributes {dimension_semantics = [#tpu.dimension_semantics<parallel>, #tpu.dimension_semantics<parallel>], iteration_bounds = array<i64: 1, 1>, scalar_prefetch = 0 : i64, scratch_operands = 0 : i64, tpu.core_type = #tpu.core_type<tc>, window_params = [{transform_indices = @transform_0, window_bounds = array<i64: 32, 512>}, {transform_indices = @transform_1, window_bounds = array<i64: 512, 128>}, {transform_indices = @transform_2, window_bounds = array<i64: 32, 128>}, {transform_indices = @transform_3, window_bounds = array<i64: 1, 2, 128>}]} {
    %c0 = arith.constant 0 : index
    %c0_0 = arith.constant 0 : index
    %0 = vector.load %arg2[%c0, %c0_0] : memref<32x512xbf16, #tpu.memory_space<vmem>>, vector<32x512xbf16>
    %c0_1 = arith.constant 0 : index
    %c0_2 = arith.constant 0 : index
    %1 = vector.load %arg3[%c0_1, %c0_2] : memref<512x128xbf16, #tpu.memory_space<vmem>>, vector<512x128xbf16>
    %cst = arith.constant dense<0.000000e+00> : vector<32x128xf32>
    %2 = tpu.matmul %0, %1, %cst {dimension_numbers = #tpu.dot_dimension_numbers<[1], [0], [0], [1], [0, 0, 1, 1], [], []>} : vector<32x512xbf16>, vector<512x128xbf16>, vector<32x128xf32> -> vector<32x128xf32>
    %3 = arith.truncf %2 : vector<32x128xf32> to vector<32x128xbf16>
    %c0_3 = arith.constant 0 : index
    %c0_4 = arith.constant 0 : index
    %4 = vector.load %arg4[%c0_3, %c0_4] : memref<32x128xbf16, #tpu.memory_space<vmem>>, vector<32x128xbf16>
    tpu.vector_store %arg4[%c0_3, %c0_4], %3 {strides = array<i32>} : memref<32x128xbf16, #tpu.memory_space<vmem>>, vector<32x128xbf16>,
    %cst_5 = arith.constant dense<0.000000e+00> : vector<128xf32>
    %5 = vector.multi_reduction <add>, %2, %cst_5 [0] : vector<32x128xf32> to vector<128xf32>
    %6 = vector.shape_cast %5 : vector<128xf32> to vector<1x128xf32>
    %c0_6 = arith.constant 0 : index
    %c0_7 = arith.constant 0 : index
    %c0_8 = arith.constant 0 : index
    %7 = vector.load %arg5[%c0_6, %c0_7, %c0_8] : memref<1x2x128xf32, #tpu.memory_space<vmem>>, vector<1x1x128xf32>
    %8 = vector.shape_cast %7 : vector<1x1x128xf32> to vector<1x128xf32>
    %9 = vector.shape_cast %6 : vector<1x128xf32> to vector<1x1x128xf32>
    tpu.vector_store %arg5[%c0_6, %c0_7, %c0_8], %9 {strides = array<i32>} : memref<1x2x128xf32, #tpu.memory_space<vmem>>, vector<1x1x128xf32>,
    %10 = arith.mulf %2, %2 : vector<32x128xf32>
    %cst_9 = arith.constant dense<0.000000e+00> : vector<128xf32>
    %11 = vector.multi_reduction <add>, %10, %cst_9 [0] : vector<32x128xf32> to vector<128xf32>
    %12 = vector.shape_cast %11 : vector<128xf32> to vector<1x128xf32>
    %c0_10 = arith.constant 0 : index
    %c1 = arith.constant 1 : index
    %c0_11 = arith.constant 0 : index
    %13 = vector.load %arg5[%c0_10, %c1, %c0_11] : memref<1x2x128xf32, #tpu.memory_space<vmem>>, vector<1x1x128xf32>
    %14 = vector.shape_cast %13 : vector<1x1x128xf32> to vector<1x128xf32>
    %15 = vector.shape_cast %12 : vector<1x128xf32> to vector<1x1x128xf32>
    tpu.vector_store %arg5[%c0_10, %c1, %c0_11], %15 {strides = array<i32>} : memref<1x2x128xf32, #tpu.memory_space<vmem>>, vector<1x1x128xf32>,
    return
  }
  func.func @transform_0(%arg0: i32, %arg1: i32) -> (i32, i32) {
    %c0_i32 = arith.constant 0 : i32
    %c0_i32_0 = arith.constant 0 : i32
    return %arg1, %c0_i32 : i32, i32
  }
  func.func @transform_1(%arg0: i32, %arg1: i32) -> (i32, i32) {
    %c0_i32 = arith.constant 0 : i32
    %c0_i32_0 = arith.constant 0 : i32
    return %c0_i32, %arg0 : i32, i32
  }
  func.func @transform_2(%arg0: i32, %arg1: i32) -> (i32, i32) {
    %c0_i32 = arith.constant 0 : i32
    return %arg1, %arg0 : i32, i32
  }
  func.func @transform_3(%arg0: i32, %arg1: i32) -> (i32, i32, i32) {
    %c0_i32 = arith.constant 0 : i32
    %c0_i32_0 = arith.constant 0 : i32
    return %arg1, %c0_i32, %arg0 : i32, i32, i32
  }
}

</mosaic_0001>

<bundles_post_ra>
// kernel: discriminator_forward.4
= control target key start
LH: loop header
LB: loop body
LE: loop exit
PB: predicated region body
PF: predicated region fallthrough
CT: control target
= control target key end

     0   :  { %s1964_s9 = smov 0   ;;  %s1966_s10 = smov 0   ;;  %s2113_s0 = inlined_call_operand.vmem [shape: bf16[2048,48], index: 0, kind: input, shape index: {}]   ;;  %s2114_s1 = inlined_call_operand.vmem [shape: bf16[48,128], index: 1, kind: input, shape index: {}]   ;;  %s2115_s2 = inlined_call_operand.vmem [shape: bf16[2048,128], index: 2, kind: output, shape index: {}]  }
   0x1   :  { %s1968_s11 = smov 0  }
   0x2 LB: > { %s21_s12 = sadd.s32 1, %s1943_s10  ;;  %p1362_p0 = scmp.ge.s32.totalorder %s1947_s11, 1  ;;  %s1947_s11 = sphi %s1968_s11, %s12_s11   ;;  %s1943_s10 = sphi %s1966_s10, %s2117_s10   ;;  %s1939_s9 = sphi %s1964_s9, %s2116_s9  }
   0x3   : > { %p22_p1 = scmp.ge.s32.totalorder %s21_s12, 4  ;;  %p136_p2 = scmp.lt.s32.totalorder %s1947_s11, 5 }
   0x5   : > { %s2119_s12 = smov (%p22_p1, %s21_s12), 0  ;;  %p137_p3 = pnand %p1362_p0, %p136_p2 }
   0x6   : > { %v1890_v0 = vld [vmem:[%s2114_s1] sm:$0xff] (!%p137_p3)   ;;  %s1363_s15 = sshll.u32 (!%p137_p3), %s1939_s9, 6  ;;  %v1891_v1 = vld [vmem:[%s2114_s1 + $0x8] sm:$0xff] (!%p137_p3)   ;;  %v1892_v2 = vld [vmem:[%s2114_s1 + $0x10] sm:$0xff] (!%p137_p3)   ;;  %vm433_vm0 = vcmask (!%p137_p3), 392192  }
   0x7   : > { %140 = sbr.rel (%p137_p3) target bundleno = 299 (0x12b), region = 28  ;;  %p166_p4 = scmp.lt.s32.totalorder (!%p137_p3), %s1363_s15, 255  ;;  %1790 = vmatprep.subr.bf16.mxu0 (!%p137_p3), %v1890_v0  ;;  %1860 = vmatprep.subr.bf16.mxu1 (!%p137_p3), %v1890_v0 }
   0x8   : > { %1791 = vmatpush3.bf16.msra.mxu0 (!%p137_p3), %v1890_v0  ;;  %1863 = vmatpush3.bf16.msra.mxu1 (!%p137_p3), %v1890_v0 }
   0x9   : > { %1792 = vmatprep.subr.bf16.mxu0 (!%p137_p3), %v1891_v1  ;;  %1861 = vmatprep.subr.bf16.mxu1 (!%p137_p3), %v1891_v1 }
   0xc   : > { %1793 = vmatpush3.bf16.msra.mxu0 (!%p137_p3), %v1891_v1  ;;  %1864 = vmatpush3.bf16.msra.mxu1 (!%p137_p3), %v1891_v1 }
   0xd   : > { %1794 = vmatprep.subr.bf16.mxu0 (!%p137_p3), %v1892_v2  ;;  %1862 = vmatprep.subr.bf16.mxu1 (!%p137_p3), %v1892_v2 }
   0xe   : > { %s2121_s15 = smov (!%p166_p4, %s1363_s15), 255 }
   0xf   : > { %s1364_s20 = sshll.u32 %s2121_s15, 2 }
  0x10   : > { %s1999_s23 = scalar_lea.vmem %s2113_s0, %s1364_s20  ;;  %1795 = vmatpush3.bf16.msra.mxu0 %v1892_v2  ;;  %1865 = vmatpush3.bf16.msra.mxu1 %v1892_v2  ;;  %s2070_s26 = scalar_lea.vmem %s2115_s2, %s1364_s20 }
  0x11   : > { %v1893_v3 = vld [vmem:[%s1999_s23] sm:$0xff]   ;;  %v1895_v5 = vld [vmem:[%s1999_s23 + $0x8] sm:$0xff]   ;;  %v1897_v7 = vld [vmem:[%s1999_s23 + $0x10] sm:$0xff]  }
  0x12   : > { %v1894_v4 = vld [vmem:[%s1999_s23 + $0x80] sm:$0xff]   ;;  %1796 = vmatprep.mubr.msk.bf16.mxu0 %vm433_vm0, %v1893_v3  ;;  %v1896_v6 = vld [vmem:[%s1999_s23 + $0x88] sm:$0xff]   ;;  %v1898_v8 = vld [vmem:[%s1999_s23 + $0x90] sm:$0xff]  }
  0x13   : > { %1828 = vmatprep.mubr.msk.bf16.mxu1 %vm433_vm0, %v1894_v4  ;;  %1797 = vmatmul.mubr.msk.bf16.vlgmr.msra.gmra.mrb[0].mxu0 %vm433_vm0, %v1895_v5  ;;  %v1899_v9 = vld [vmem:[%s1999_s23 + $0x18] sm:$0xff]   ;;  %v1901_v11 = vld [vmem:[%s1999_s23 + $0x20] sm:$0xff]   ;;  %v1903_v13 = vld [vmem:[%s1999_s23 + $0x28] sm:$0xff]  }
  0x14   : > { %1829 = vmatmul.mubr.msk.bf16.vlgmr.msra.gmra.mrb[0].mxu1 %vm433_vm0, %v1896_v6  ;;  %1800 = vmatprep.mubr.msk.bf16.mxu0 %vm433_vm0, %v1897_v7  ;;  %v1900_v10 = vld [vmem:[%s1999_s23 + $0x98] sm:$0xff]   ;;  %v1902_v12 = vld [vmem:[%s1999_s23 + $0xa0] sm:$0xff]   ;;  %v1904_v14 = vld [vmem:[%s1999_s23 + $0xa8] sm:$0xff]  }
  0x15   : > { %1832 = vmatprep.mubr.msk.bf16.mxu1 %vm433_vm0, %v1898_v8  ;;  %v1905_v15 = vld [vmem:[%s1999_s23 + $0x30] sm:$0xff]   ;;  %v1907_v17 = vld [vmem:[%s1999_s23 + $0x38] sm:$0xff]   ;;  %v1909_v19 = vld [vmem:[%s1999_s23 + $0x40] sm:$0xff]  }
  0x16   : > { %v1906_v16 = vld [vmem:[%s1999_s23 + $0xb0] sm:$0xff]   ;;  %v1908_v18 = vld [vmem:[%s1999_s23 + $0xb8] sm:$0xff]   ;;  %v1910_v20 = vld [vmem:[%s1999_s23 + $0xc0] sm:$0xff]  }
  0x17   : > { %v1911_v21 = vld [vmem:[%s1999_s23 + $0x48] sm:$0xff]   ;;  %v1913_v23 = vld [vmem:[%s1999_s23 + $0x50] sm:$0xff]   ;;  %v1915_v25 = vld [vmem:[%s1999_s23 + $0x58] sm:$0xff]  }
  0x18   : > { %v1912_v22 = vld [vmem:[%s1999_s23 + $0xc8] sm:$0xff]   ;;  %v1914_v24 = vld [vmem:[%s1999_s23 + $0xd0] sm:$0xff]   ;;  %v1916_v26 = vld [vmem:[%s1999_s23 + $0xd8] sm:$0xff]  }
  0x19   : > { %v1917_v27 = vld [vmem:[%s1999_s23 + $0x60] sm:$0xff]   ;;  %v1919_v29 = vld [vmem:[%s1999_s23 + $0x68] sm:$0xff]   ;;  %v1921_v31 = vld [vmem:[%s1999_s23 + $0x70] sm:$0xff]  }
  0x1a   : > { %v1918_v28 = vld [vmem:[%s1999_s23 + $0xe0] sm:$0xff]   ;;  %v1920_v30 = vld [vmem:[%s1999_s23 + $0xe8] sm:$0xff]   ;;  %v1922_v32 = vld [vmem:[%s1999_s23 + $0xf0] sm:$0xff]  }
  0x1b   : > { %1801 = vmatmul.mubr.msk.bf16.gmra.mrb[4].mxu0 %vm433_vm0, %v1899_v9  ;;  %v1923_v33 = vld [vmem:[%s1999_s23 + $0x78] sm:$0xff]  }
  0x1c   : > { %1833 = vmatmul.mubr.msk.bf16.gmra.mrb[4].mxu1 %vm433_vm0, %v1900_v10  ;;  %1804 = vmatprep.mubr.msk.bf16.mxu0 %vm433_vm0, %v1901_v11  ;;  %v1924_v34 = vld [vmem:[%s1999_s23 + $0xf8] sm:$0xff]  }
  0x1d   : > { %1836 = vmatprep.mubr.msk.bf16.mxu1 %vm433_vm0, %v1902_v12 }
  0x23   : > { %1805 = vmatmul.mubr.msk.bf16.gmra.mrb[8].mxu0 %vm433_vm0, %v1903_v13 }
  0x24   : > { %1837 = vmatmul.mubr.msk.bf16.gmra.mrb[8].mxu1 %vm433_vm0, %v1904_v14  ;;  %1808 = vmatprep.mubr.msk.bf16.mxu0 %vm433_vm0, %v1905_v15 }
  0x25   : > { %1840 = vmatprep.mubr.msk.bf16.mxu1 %vm433_vm0, %v1906_v16 }
  0x2b   : > { %1809 = vmatmul.mubr.msk.bf16.gmra.mrb[12].mxu0 %vm433_vm0, %v1907_v17 }
  0x2c   : > { %1841 = vmatmul.mubr.msk.bf16.gmra.mrb[12].mxu1 %vm433_vm0, %v1908_v18  ;;  %1812 = vmatprep.mubr.msk.bf16.mxu0 %vm433_vm0, %v1909_v19 }
  0x2d   : > { %1844 = vmatprep.mubr.msk.bf16.mxu1 %vm433_vm0, %v1910_v20 }
  0x33   : > { %1813 = vmatmul.mubr.msk.bf16.gmra.mrb[16].mxu0 %vm433_vm0, %v1911_v21 }
  0x34   : > { %1845 = vmatmul.mubr.msk.bf16.gmra.mrb[16].mxu1 %vm433_vm0, %v1912_v22  ;;  %1816 = vmatprep.mubr.msk.bf16.mxu0 %vm433_vm0, %v1913_v23 }
  0x35   : > { %1848 = vmatprep.mubr.msk.bf16.mxu1 %vm433_vm0, %v1914_v24 }
  0x3b   : > { %1817 = vmatmul.mubr.msk.bf16.gmra.mrb[20].mxu0 %vm433_vm0, %v1915_v25 }
  0x3c   : > { %1849 = vmatmul.mubr.msk.bf16.gmra.mrb[20].mxu1 %vm433_vm0, %v1916_v26  ;;  %1820 = vmatprep.mubr.msk.bf16.mxu0 %vm433_vm0, %v1917_v27 }
  0x3d   : > { %1852 = vmatprep.mubr.msk.bf16.mxu1 %vm433_vm0, %v1918_v28 }
  0x43   : > { %1821 = vmatmul.mubr.msk.bf16.gmra.mrb[24].mxu0 %vm433_vm0, %v1919_v29 }
  0x44   : > { %1853 = vmatmul.mubr.msk.bf16.gmra.mrb[24].mxu1 %vm433_vm0, %v1920_v30  ;;  %1824 = vmatprep.mubr.msk.bf16.mxu0 %vm433_vm0, %v1921_v31 }
  0x45   : > { %1856 = vmatprep.mubr.msk.bf16.mxu1 %vm433_vm0, %v1922_v32 }
  0x4b   : > { %1825 = vmatmul.mubr.msk.bf16.gmra.mrb[28].mxu0 %vm433_vm0, %v1923_v33 }
  0x4c   : > { %1857 = vmatmul.mubr.msk.bf16.gmra.mrb[28].mxu1 %vm433_vm0, %v1924_v34 }
  0xe6   : > { %v1798_v35 = vpop.f32.mrb[0].mxu0 }
  0xe7   : > { %v1830_v36 = vpop.f32.mrb[0].mxu1  ;;  %v821_v37 = vmul.f32 0.2, %v1798_v35  ;;  %v564_v39 = vpop.f32.mrb[1].mxu0 }
  0xe8   : > { %v853_v38 = vmul.f32 0.2, %v1830_v36  ;;  %v692_v40 = vpop.f32.mrb[1].mxu1  ;;  %v819_v41 = vmul.f32 0.2, %v564_v39  ;;  %v1799_v43 = vpop.f32.mrb[2].mxu0 }
  0xe9   : > { %v851_v42 = vmul.f32 0.2, %v692_v40  ;;  %v1831_v44 = vpop.f32.mrb[2].mxu1  ;;  %v822_v45 = vmul.f32 0.2, %v1799_v43  ;;  %v567_v47 = vpop.f32.mrb[3].mxu0  ;;  %v885_v51 = vmax.f32 %v1798_v35, %v821_v37 }
  0xea   : > { %v854_v46 = vmul.f32 0.2, %v1831_v44  ;;  %v695_v48 = vpop.f32.mrb[3].mxu1  ;;  %v820_v49 = vmul.f32 0.2, %v567_v47  ;;  %v917_v52 = vmax.f32 %v1830_v36, %v853_v38  ;;  %v883_v55 = vmax.f32 %v564_v39, %v819_v41 }
  0xeb   : > { %v852_v50 = vmul.f32 0.2, %v695_v48  ;;  %v886_v53 = vmax.f32 %v1799_v43, %v822_v45  ;;  %v915_v56 = vmax.f32 %v692_v40, %v851_v42 }
  0xec   : > { %v918_v54 = vmax.f32 %v1831_v44, %v854_v46  ;;  %v884_v57 = vmax.f32 %v567_v47, %v820_v49 }
  0xed   : > { %v916_v58 = vmax.f32 %v695_v48, %v852_v50  ;;  %v1572_v59 = vpack.c.bf16 %v886_v53, %v885_v51 }
  0xee   : > { %v1652_v60 = vpack.c.bf16 %v918_v54, %v917_v52  ;;  %v1567_v61 = vpack.c.bf16 %v884_v57, %v883_v55  ;;  %v1802_v63 = vpop.f32.mrb[4].mxu0 }
  0xef   : > { %v1647_v62 = vpack.c.bf16 %v916_v58, %v915_v56  ;;  %v1834_v0 = vpop.f32.mrb[4].mxu1  ;;  %1724 = vst [vmem:[%s2070_s26 + $0x8] sm:$0xff] %v1572_v59   ;;  %v825_v1 = vmul.f32 0.2, %v1802_v63  ;;  %v580_v3 = vpop.f32.mrb[5].mxu0 }
  0xf0   : > { %1740 = vst [vmem:[%s2070_s26 + $0x88] sm:$0xff] %v1652_v60   ;;  %v857_v2 = vmul.f32 0.2, %v1834_v0  ;;  %v708_v4 = vpop.f32.mrb[5].mxu1  ;;  %1568 = vst [vmem:[%s2070_s26] sm:$0xff] %v1567_v61   ;;  %v823_v5 = vmul.f32 0.2, %v580_v3 }
  0xf1   : > { %1739 = vst [vmem:[%s2070_s26 + $0x80] sm:$0xff] %v1647_v62   ;;  %v855_v6 = vmul.f32 0.2, %v708_v4  ;;  %v1803_v7 = vpop.f32.mrb[6].mxu0  ;;  %v1835_v8 = vpop.f32.mrb[6].mxu1  ;;  %v889_v15 = vmax.f32 %v1802_v63, %v825_v1 }
  0xf2   : > { %v826_v9 = vmul.f32 0.2, %v1803_v7  ;;  %v858_v10 = vmul.f32 0.2, %v1835_v8  ;;  %v583_v11 = vpop.f32.mrb[7].mxu0  ;;  %v711_v12 = vpop.f32.mrb[7].mxu1  ;;  %v921_v16 = vmax.f32 %v1834_v0, %v857_v2  ;;  %v887_v19 = vmax.f32 %v580_v3, %v823_v5 }
  0xf3   : > { %v824_v13 = vmul.f32 0.2, %v583_v11  ;;  %v856_v14 = vmul.f32 0.2, %v711_v12  ;;  %v919_v20 = vmax.f32 %v708_v4, %v855_v6 }
  0xf4   : > { %v890_v17 = vmax.f32 %v1803_v7, %v826_v9  ;;  %v922_v18 = vmax.f32 %v1835_v8, %v858_v10 }
  0xf5   : > { %v888_v21 = vmax.f32 %v583_v11, %v824_v13  ;;  %v920_v22 = vmax.f32 %v711_v12, %v856_v14 }
  0xf6   : > { %v1582_v23 = vpack.c.bf16 %v890_v17, %v889_v15  ;;  %v1662_v24 = vpack.c.bf16 %v922_v18, %v921_v16  ;;  %v1806_v27 = vpop.f32.mrb[8].mxu0 }
  0xf7   : > { %v1577_v25 = vpack.c.bf16 %v888_v21, %v887_v19  ;;  %v1657_v26 = vpack.c.bf16 %v920_v22, %v919_v20  ;;  %v1838_v28 = vpop.f32.mrb[8].mxu1  ;;  %v829_v29 = vmul.f32 0.2, %v1806_v27  ;;  %v596_v31 = vpop.f32.mrb[9].mxu0 }
  0xf8   : > { %1726 = vst [vmem:[%s2070_s26 + $0x18] sm:$0xff] %v1582_v23   ;;  %1742 = vst [vmem:[%s2070_s26 + $0x98] sm:$0xff] %v1662_v24   ;;  %v861_v30 = vmul.f32 0.2, %v1838_v28  ;;  %v724_v32 = vpop.f32.mrb[9].mxu1  ;;  %v1807_v35 = vpop.f32.mrb[10].mxu0 }
  0xf9   : > { %1725 = vst [vmem:[%s2070_s26 + $0x10] sm:$0xff] %v1577_v25   ;;  %1741 = vst [vmem:[%s2070_s26 + $0x90] sm:$0xff] %v1657_v26   ;;  %v827_v33 = vmul.f32 0.2, %v596_v31  ;;  %v859_v34 = vmul.f32 0.2, %v724_v32  ;;  %v893_v43 = vmax.f32 %v1806_v27, %v829_v29 }
  0xfa   : > { %v1839_v36 = vpop.f32.mrb[10].mxu1  ;;  %v830_v37 = vmul.f32 0.2, %v1807_v35  ;;  %v599_v39 = vpop.f32.mrb[11].mxu0  ;;  %v925_v44 = vmax.f32 %v1838_v28, %v861_v30 }
  0xfb   : > { %v862_v38 = vmul.f32 0.2, %v1839_v36  ;;  %v727_v40 = vpop.f32.mrb[11].mxu1  ;;  %v828_v41 = vmul.f32 0.2, %v599_v39  ;;  %v891_v47 = vmax.f32 %v596_v31, %v827_v33  ;;  %v923_v48 = vmax.f32 %v724_v32, %v859_v34 }
  0xfc   : > { %v860_v42 = vmul.f32 0.2, %v727_v40  ;;  %v894_v45 = vmax.f32 %v1807_v35, %v830_v37 }
  0xfd   : > { %v926_v46 = vmax.f32 %v1839_v36, %v862_v38  ;;  %v892_v49 = vmax.f32 %v599_v39, %v828_v41 }
  0xfe   : > { %v924_v50 = vmax.f32 %v727_v40, %v860_v42  ;;  %v1592_v51 = vpack.c.bf16 %v894_v45, %v893_v43  ;;  %v1810_v55 = vpop.f32.mrb[12].mxu0 }
  0xff   : > { %v1672_v52 = vpack.c.bf16 %v926_v46, %v925_v44  ;;  %v1587_v53 = vpack.c.bf16 %v892_v49, %v891_v47  ;;  %v1842_v56 = vpop.f32.mrb[12].mxu1  ;;  %v833_v57 = vmul.f32 0.2, %v1810_v55  ;;  %v612_v59 = vpop.f32.mrb[13].mxu0 }
 0x100   : > { %v1667_v54 = vpack.c.bf16 %v924_v50, %v923_v48  ;;  %1728 = vst [vmem:[%s2070_s26 + $0x28] sm:$0xff] %v1592_v51   ;;  %v865_v58 = vmul.f32 0.2, %v1842_v56  ;;  %v740_v60 = vpop.f32.mrb[13].mxu1  ;;  %v831_v61 = vmul.f32 0.2, %v612_v59 }
 0x101   : > { %1744 = vst [vmem:[%s2070_s26 + $0xa8] sm:$0xff] %v1672_v52   ;;  %1727 = vst [vmem:[%s2070_s26 + $0x20] sm:$0xff] %v1587_v53   ;;  %v863_v62 = vmul.f32 0.2, %v740_v60  ;;  %v1811_v63 = vpop.f32.mrb[14].mxu0  ;;  %v1843_v0 = vpop.f32.mrb[14].mxu1  ;;  %v897_v7 = vmax.f32 %v1810_v55, %v833_v57 }
 0x102   : > { %1743 = vst [vmem:[%s2070_s26 + $0xa0] sm:$0xff] %v1667_v54   ;;  %v834_v1 = vmul.f32 0.2, %v1811_v63  ;;  %v866_v2 = vmul.f32 0.2, %v1843_v0  ;;  %v615_v3 = vpop.f32.mrb[15].mxu0  ;;  %v929_v8 = vmax.f32 %v1842_v56, %v865_v58  ;;  %v895_v11 = vmax.f32 %v612_v59, %v831_v61 }
 0x103   : > { %v743_v4 = vpop.f32.mrb[15].mxu1  ;;  %v832_v5 = vmul.f32 0.2, %v615_v3  ;;  %v927_v12 = vmax.f32 %v740_v60, %v863_v62 }
 0x104   : > { %v864_v6 = vmul.f32 0.2, %v743_v4  ;;  %v898_v9 = vmax.f32 %v1811_v63, %v834_v1  ;;  %v930_v10 = vmax.f32 %v1843_v0, %v866_v2 }
 0x105   : > { %v896_v13 = vmax.f32 %v615_v3, %v832_v5 }
 0x106   : > { %v928_v14 = vmax.f32 %v743_v4, %v864_v6  ;;  %v1602_v15 = vpack.c.bf16 %v898_v9, %v897_v7  ;;  %v1682_v16 = vpack.c.bf16 %v930_v10, %v929_v8  ;;  %v1814_v19 = vpop.f32.mrb[16].mxu0 }
 0x107   : > { %v1597_v17 = vpack.c.bf16 %v896_v13, %v895_v11  ;;  %v1846_v20 = vpop.f32.mrb[16].mxu1  ;;  %v837_v21 = vmul.f32 0.2, %v1814_v19  ;;  %v628_v23 = vpop.f32.mrb[17].mxu0 }
 0x108   : > { %v1677_v18 = vpack.c.bf16 %v928_v14, %v927_v12  ;;  %1730 = vst [vmem:[%s2070_s26 + $0x38] sm:$0xff] %v1602_v15   ;;  %1746 = vst [vmem:[%s2070_s26 + $0xb8] sm:$0xff] %v1682_v16   ;;  %v869_v22 = vmul.f32 0.2, %v1846_v20  ;;  %v756_v24 = vpop.f32.mrb[17].mxu1  ;;  %v1815_v27 = vpop.f32.mrb[18].mxu0 }
 0x109   : > { %1729 = vst [vmem:[%s2070_s26 + $0x30] sm:$0xff] %v1597_v17   ;;  %v835_v25 = vmul.f32 0.2, %v628_v23  ;;  %v867_v26 = vmul.f32 0.2, %v756_v24  ;;  %v1847_v28 = vpop.f32.mrb[18].mxu1  ;;  %v901_v35 = vmax.f32 %v1814_v19, %v837_v21 }
 0x10a   : > { %1745 = vst [vmem:[%s2070_s26 + $0xb0] sm:$0xff] %v1677_v18   ;;  %v838_v29 = vmul.f32 0.2, %v1815_v27  ;;  %v870_v30 = vmul.f32 0.2, %v1847_v28  ;;  %v631_v31 = vpop.f32.mrb[19].mxu0  ;;  %v933_v36 = vmax.f32 %v1846_v20, %v869_v22 }
 0x10b   : > { %v759_v32 = vpop.f32.mrb[19].mxu1  ;;  %v836_v33 = vmul.f32 0.2, %v631_v31  ;;  %v899_v39 = vmax.f32 %v628_v23, %v835_v25  ;;  %v931_v40 = vmax.f32 %v756_v24, %v867_v26 }
 0x10c   : > { %v868_v34 = vmul.f32 0.2, %v759_v32  ;;  %v902_v37 = vmax.f32 %v1815_v27, %v838_v29  ;;  %v934_v38 = vmax.f32 %v1847_v28, %v870_v30 }
 0x10d   : > { %v900_v41 = vmax.f32 %v631_v31, %v836_v33 }
 0x10e   : > { %v932_v42 = vmax.f32 %v759_v32, %v868_v34  ;;  %v1612_v43 = vpack.c.bf16 %v902_v37, %v901_v35  ;;  %v1692_v44 = vpack.c.bf16 %v934_v38, %v933_v36  ;;  %v1818_v47 = vpop.f32.mrb[20].mxu0 }
 0x10f   : > { %v1607_v45 = vpack.c.bf16 %v900_v41, %v899_v39  ;;  %v1850_v48 = vpop.f32.mrb[20].mxu1  ;;  %v841_v49 = vmul.f32 0.2, %v1818_v47  ;;  %v644_v51 = vpop.f32.mrb[21].mxu0 }
 0x110   : > { %v1687_v46 = vpack.c.bf16 %v932_v42, %v931_v40  ;;  %1732 = vst [vmem:[%s2070_s26 + $0x48] sm:$0xff] %v1612_v43   ;;  %1748 = vst [vmem:[%s2070_s26 + $0xc8] sm:$0xff] %v1692_v44   ;;  %v873_v50 = vmul.f32 0.2, %v1850_v48  ;;  %v772_v52 = vpop.f32.mrb[21].mxu1  ;;  %v1819_v55 = vpop.f32.mrb[22].mxu0 }
 0x111   : > { %1731 = vst [vmem:[%s2070_s26 + $0x40] sm:$0xff] %v1607_v45   ;;  %v839_v53 = vmul.f32 0.2, %v644_v51  ;;  %v871_v54 = vmul.f32 0.2, %v772_v52  ;;  %v1851_v56 = vpop.f32.mrb[22].mxu1  ;;  %v905_v63 = vmax.f32 %v1818_v47, %v841_v49 }
 0x112   : > { %1747 = vst [vmem:[%s2070_s26 + $0xc0] sm:$0xff] %v1687_v46   ;;  %v842_v57 = vmul.f32 0.2, %v1819_v55  ;;  %v874_v58 = vmul.f32 0.2, %v1851_v56  ;;  %v647_v59 = vpop.f32.mrb[23].mxu0  ;;  %v937_v0 = vmax.f32 %v1850_v48, %v873_v50 }
 0x113   : > { %v775_v60 = vpop.f32.mrb[23].mxu1  ;;  %v840_v61 = vmul.f32 0.2, %v647_v59  ;;  %v903_v3 = vmax.f32 %v644_v51, %v839_v53  ;;  %v935_v4 = vmax.f32 %v772_v52, %v871_v54 }
 0x114   : > { %v872_v62 = vmul.f32 0.2, %v775_v60  ;;  %v906_v1 = vmax.f32 %v1819_v55, %v842_v57  ;;  %v938_v2 = vmax.f32 %v1851_v56, %v874_v58 }
 0x115   : > { %v904_v5 = vmax.f32 %v647_v59, %v840_v61 }
 0x116   : > { %v936_v6 = vmax.f32 %v775_v60, %v872_v62  ;;  %v1622_v7 = vpack.c.bf16 %v906_v1, %v905_v63  ;;  %v1702_v8 = vpack.c.bf16 %v938_v2, %v937_v0  ;;  %v1822_v11 = vpop.f32.mrb[24].mxu0 }
 0x117   : > { %v1617_v9 = vpack.c.bf16 %v904_v5, %v903_v3  ;;  %v1854_v12 = vpop.f32.mrb[24].mxu1  ;;  %v845_v13 = vmul.f32 0.2, %v1822_v11  ;;  %v660_v15 = vpop.f32.mrb[25].mxu0 }
 0x118   : > { %v1697_v10 = vpack.c.bf16 %v936_v6, %v935_v4  ;;  %1734 = vst [vmem:[%s2070_s26 + $0x58] sm:$0xff] %v1622_v7   ;;  %1750 = vst [vmem:[%s2070_s26 + $0xd8] sm:$0xff] %v1702_v8   ;;  %v877_v14 = vmul.f32 0.2, %v1854_v12  ;;  %v788_v16 = vpop.f32.mrb[25].mxu1  ;;  %v1823_v19 = vpop.f32.mrb[26].mxu0 }
 0x119   : > { %1733 = vst [vmem:[%s2070_s26 + $0x50] sm:$0xff] %v1617_v9   ;;  %v843_v17 = vmul.f32 0.2, %v660_v15  ;;  %v875_v18 = vmul.f32 0.2, %v788_v16  ;;  %v1855_v20 = vpop.f32.mrb[26].mxu1  ;;  %v909_v27 = vmax.f32 %v1822_v11, %v845_v13 }
 0x11a   : > { %1749 = vst [vmem:[%s2070_s26 + $0xd0] sm:$0xff] %v1697_v10   ;;  %v846_v21 = vmul.f32 0.2, %v1823_v19  ;;  %v878_v22 = vmul.f32 0.2, %v1855_v20  ;;  %v663_v23 = vpop.f32.mrb[27].mxu0  ;;  %v941_v28 = vmax.f32 %v1854_v12, %v877_v14 }
 0x11b   : > { %v791_v24 = vpop.f32.mrb[27].mxu1  ;;  %v844_v25 = vmul.f32 0.2, %v663_v23  ;;  %v907_v31 = vmax.f32 %v660_v15, %v843_v17  ;;  %v939_v32 = vmax.f32 %v788_v16, %v875_v18 }
 0x11c   : > { %v876_v26 = vmul.f32 0.2, %v791_v24  ;;  %v910_v29 = vmax.f32 %v1823_v19, %v846_v21  ;;  %v942_v30 = vmax.f32 %v1855_v20, %v878_v22 }
 0x11d   : > { %v908_v33 = vmax.f32 %v663_v23, %v844_v25 }
 0x11e   : > { %v940_v34 = vmax.f32 %v791_v24, %v876_v26  ;;  %v1632_v35 = vpack.c.bf16 %v910_v29, %v909_v27  ;;  %v1712_v36 = vpack.c.bf16 %v942_v30, %v941_v28  ;;  %v1826_v39 = vpop.f32.mrb[28].mxu0 }
 0x11f   : > { %v1627_v37 = vpack.c.bf16 %v908_v33, %v907_v31  ;;  %v1858_v40 = vpop.f32.mrb[28].mxu1  ;;  %v849_v41 = vmul.f32 0.2, %v1826_v39  ;;  %v676_v43 = vpop.f32.mrb[29].mxu0 }
 0x120   : > { %v1707_v38 = vpack.c.bf16 %v940_v34, %v939_v32  ;;  %1736 = vst [vmem:[%s2070_s26 + $0x68] sm:$0xff] %v1632_v35   ;;  %1752 = vst [vmem:[%s2070_s26 + $0xe8] sm:$0xff] %v1712_v36   ;;  %v881_v42 = vmul.f32 0.2, %v1858_v40  ;;  %v804_v44 = vpop.f32.mrb[29].mxu1  ;;  %v1827_v47 = vpop.f32.mrb[30].mxu0 }
 0x121   : > { %1735 = vst [vmem:[%s2070_s26 + $0x60] sm:$0xff] %v1627_v37   ;;  %v847_v45 = vmul.f32 0.2, %v676_v43  ;;  %v879_v46 = vmul.f32 0.2, %v804_v44  ;;  %v1859_v48 = vpop.f32.mrb[30].mxu1  ;;  %v913_v55 = vmax.f32 %v1826_v39, %v849_v41 }
 0x122   : > { %1751 = vst [vmem:[%s2070_s26 + $0xe0] sm:$0xff] %v1707_v38   ;;  %v850_v49 = vmul.f32 0.2, %v1827_v47  ;;  %v882_v50 = vmul.f32 0.2, %v1859_v48  ;;  %v679_v51 = vpop.f32.mrb[31].mxu0  ;;  %v945_v56 = vmax.f32 %v1858_v40, %v881_v42 }
 0x123   : > { %v807_v52 = vpop.f32.mrb[31].mxu1  ;;  %v848_v53 = vmul.f32 0.2, %v679_v51  ;;  %v911_v59 = vmax.f32 %v676_v43, %v847_v45  ;;  %v943_v60 = vmax.f32 %v804_v44, %v879_v46 }
 0x124   : > { %v880_v54 = vmul.f32 0.2, %v807_v52  ;;  %v914_v57 = vmax.f32 %v1827_v47, %v850_v49  ;;  %v946_v58 = vmax.f32 %v1859_v48, %v882_v50 }
 0x125   : > { %v912_v61 = vmax.f32 %v679_v51, %v848_v53 }
 0x126   : > { %v944_v62 = vmax.f32 %v807_v52, %v880_v54  ;;  %v1642_v63 = vpack.c.bf16 %v914_v57, %v913_v55  ;;  %v1722_v0 = vpack.c.bf16 %v946_v58, %v945_v56 }
 0x127   : > { %v1637_v1 = vpack.c.bf16 %v912_v61, %v911_v59 }
 0x128   : > { %v1717_v2 = vpack.c.bf16 %v944_v62, %v943_v60  ;;  %1738 = vst [vmem:[%s2070_s26 + $0x78] sm:$0xff] %v1642_v63   ;;  %1754 = vst [vmem:[%s2070_s26 + $0xf8] sm:$0xff] %v1722_v0  }
 0x129   : > { %1737 = vst [vmem:[%s2070_s26 + $0x70] sm:$0xff] %v1637_v1  }
 0x12a   : > { %1753 = vst [vmem:[%s2070_s26 + $0xf0] sm:$0xff] %v1717_v2  }
 0x12b PF: > { %s12_s11 = sadd.s32 1, %s1947_s11   ;;  %s2116_s9 = smov %s1943_s10 }
 0x12c   : > { %p9_p5 = scmp.ge.s32.totalorder %s12_s11, 6   ;;  %s2117_s10 = smov %s2119_s12 }
 0x12e   :  { %11 = sbr.rel (!%p9_p5) target bundleno = 2 (0x2), region = 61 }

// kernel: discriminator_forward.5
= control target key start
LH: loop header
LB: loop body
LE: loop exit
PB: predicated region body
PF: predicated region fallthrough
CT: control target
= control target key end

     0   :  { %s2124_s1 = inlined_call_operand.vmem [shape: bf16[128,128], index: 1, kind: input, shape index: {}]   ;;  %s2125_s0 = inlined_call_operand.vmem [shape: bf16[512,128], index: 0, kind: input, shape index: {}]   ;;  %s2126_s2 = inlined_call_operand.vmem [shape: bf16[512,128], index: 2, kind: output, shape index: {0}]   ;;  %s2127_s3 = inlined_call_operand.vmem [shape: f32[1,2,128], index: 3, kind: output, shape index: {1}]  }
   0x1   :  { %v1650_v0 = vld [vmem:[%s2124_s1] sm:$0xff]   ;;  %v1651_v1 = vld [vmem:[%s2124_s1 + $0x8] sm:$0xff]   ;;  %v1652_v2 = vld [vmem:[%s2124_s1 + $0x10] sm:$0xff]  }
   0x2   :  { %1554 = vmatprep.subr.bf16.mxu0 %v1650_v0  ;;  %1634 = vmatprep.subr.bf16.mxu1 %v1650_v0  ;;  %v1653_v3 = vld [vmem:[%s2124_s1 + $0x18] sm:$0xff]   ;;  %v1658_v4 = vld [vmem:[%s2125_s0] sm:$0xff]   ;;  %v1655_v6 = vld [vmem:[%s2124_s1 + $0x28] sm:$0xff]  }
   0x3   :  { %1555 = vmatpush3.bf16.msra.mxu0 %v1650_v0  ;;  %1642 = vmatpush3.bf16.msra.mxu1 %v1650_v0  ;;  %v1654_v5 = vld [vmem:[%s2124_s1 + $0x20] sm:$0xff]   ;;  %v1656_v7 = vld [vmem:[%s2124_s1 + $0x30] sm:$0xff]   ;;  %v1657_v8 = vld [vmem:[%s2124_s1 + $0x38] sm:$0xff]  }
   0x4   :  { %1556 = vmatprep.subr.bf16.mxu0 %v1651_v1  ;;  %1635 = vmatprep.subr.bf16.mxu1 %v1651_v1  ;;  %v1674_v9 = vld [vmem:[%s2125_s0 + $0x80] sm:$0xff]   ;;  %v1659_v10 = vld [vmem:[%s2125_s0 + $0x8] sm:$0xff]   ;;  %v1660_v11 = vld [vmem:[%s2125_s0 + $0x10] sm:$0xff]  }
   0x5   :  { %1570 = vmatprep.mubr.bf16.mxu0 %v1658_v4  ;;  %1602 = vmatprep.mubr.bf16.mxu1 %v1674_v9  ;;  %v1675_v12 = vld [vmem:[%s2125_s0 + $0x88] sm:$0xff]   ;;  %v1676_v13 = vld [vmem:[%s2125_s0 + $0x90] sm:$0xff]   ;;  %v1661_v14 = vld [vmem:[%s2125_s0 + $0x18] sm:$0xff]  }
   0x6   :  { %v1662_v15 = vld [vmem:[%s2125_s0 + $0x20] sm:$0xff]   ;;  %v1677_v16 = vld [vmem:[%s2125_s0 + $0x98] sm:$0xff]   ;;  %v1663_v18 = vld [vmem:[%s2125_s0 + $0x28] sm:$0xff]  }
   0x7   :  { %1557 = vmatpush3.bf16.msra.mxu0 %v1651_v1  ;;  %1643 = vmatpush3.bf16.msra.mxu1 %v1651_v1  ;;  %v1678_v17 = vld [vmem:[%s2125_s0 + $0xa0] sm:$0xff]   ;;  %v1679_v19 = vld [vmem:[%s2125_s0 + $0xa8] sm:$0xff]   ;;  %v1664_v20 = vld [vmem:[%s2125_s0 + $0x30] sm:$0xff]  }
   0x8   :  { %1558 = vmatprep.subr.bf16.mxu0 %v1652_v2  ;;  %1636 = vmatprep.subr.bf16.mxu1 %v1652_v2  ;;  %v1680_v21 = vld [vmem:[%s2125_s0 + $0xb0] sm:$0xff]   ;;  %v1665_v22 = vld [vmem:[%s2125_s0 + $0x38] sm:$0xff]   ;;  %v1666_v24 = vld [vmem:[%s2125_s0 + $0x40] sm:$0xff]  }
   0x9   :  { %v1681_v23 = vld [vmem:[%s2125_s0 + $0xb8] sm:$0xff]   ;;  %v1682_v25 = vld [vmem:[%s2125_s0 + $0xc0] sm:$0xff]   ;;  %v1667_v26 = vld [vmem:[%s2125_s0 + $0x48] sm:$0xff]  }
   0xa   :  { %v1683_v27 = vld [vmem:[%s2125_s0 + $0xc8] sm:$0xff]   ;;  %v1668_v28 = vld [vmem:[%s2125_s0 + $0x50] sm:$0xff]   ;;  %v1669_v30 = vld [vmem:[%s2125_s0 + $0x58] sm:$0xff]  }
   0xb   :  { %1559 = vmatpush3.bf16.msra.mxu0 %v1652_v2  ;;  %1644 = vmatpush3.bf16.msra.mxu1 %v1652_v2  ;;  %v1684_v29 = vld [vmem:[%s2125_s0 + $0xd0] sm:$0xff]   ;;  %v1685_v31 = vld [vmem:[%s2125_s0 + $0xd8] sm:$0xff]   ;;  %v1670_v32 = vld [vmem:[%s2125_s0 + $0x60] sm:$0xff]  }
   0xc   :  { %1560 = vmatprep.subr.bf16.mxu0 %v1653_v3  ;;  %1637 = vmatprep.subr.bf16.mxu1 %v1653_v3  ;;  %v1686_v33 = vld [vmem:[%s2125_s0 + $0xe0] sm:$0xff]   ;;  %v1671_v34 = vld [vmem:[%s2125_s0 + $0x68] sm:$0xff]   ;;  %v1672_v36 = vld [vmem:[%s2125_s0 + $0x70] sm:$0xff]  }
   0xd   :  { %v1687_v35 = vld [vmem:[%s2125_s0 + $0xe8] sm:$0xff]   ;;  %v1688_v37 = vld [vmem:[%s2125_s0 + $0xf0] sm:$0xff]   ;;  %v1673_v38 = vld [vmem:[%s2125_s0 + $0x78] sm:$0xff]  }
   0xe   :  { %v1689_v39 = vld [vmem:[%s2125_s0 + $0xf8] sm:$0xff]  }
   0xf   :  { %1561 = vmatpush3.bf16.msra.mxu0 %v1653_v3  ;;  %1645 = vmatpush3.bf16.msra.mxu1 %v1653_v3 }
  0x10   :  { %1562 = vmatprep.subr.bf16.mxu0 %v1654_v5  ;;  %1638 = vmatprep.subr.bf16.mxu1 %v1654_v5 }
  0x13   :  { %1563 = vmatpush3.bf16.msra.mxu0 %v1654_v5  ;;  %1646 = vmatpush3.bf16.msra.mxu1 %v1654_v5 }
  0x14   :  { %1564 = vmatprep.subr.bf16.mxu0 %v1655_v6  ;;  %1639 = vmatprep.subr.bf16.mxu1 %v1655_v6 }
  0x17   :  { %1565 = vmatpush3.bf16.msra.mxu0 %v1655_v6  ;;  %1647 = vmatpush3.bf16.msra.mxu1 %v1655_v6 }
  0x18   :  { %1566 = vmatprep.subr.bf16.mxu0 %v1656_v7  ;;  %1640 = vmatprep.subr.bf16.mxu1 %v1656_v7 }
  0x1b   :  { %1567 = vmatpush3.bf16.msra.mxu0 %v1656_v7  ;;  %1648 = vmatpush3.bf16.msra.mxu1 %v1656_v7 }
  0x1c   :  { %1568 = vmatprep.subr.bf16.mxu0 %v1657_v8  ;;  %1641 = vmatprep.subr.bf16.mxu1 %v1657_v8 }
  0x1f   :  { %1569 = vmatpush3.bf16.msra.mxu0 %v1657_v8  ;;  %1649 = vmatpush3.bf16.msra.mxu1 %v1657_v8 }
  0x22   :  { %1571 = vmatmul.mubr.bf16.vlgmr.msra.gmra.mrb[0].mxu0 %v1659_v10  ;;  %1603 = vmatmul.mubr.bf16.vlgmr.msra.gmra.mrb[0].mxu1 %v1675_v12 }
  0x23   :  { %1574 = vmatprep.mubr.bf16.mxu0 %v1660_v11  ;;  %1606 = vmatprep.mubr.bf16.mxu1 %v1676_v13 }
  0x2a   :  { %1575 = vmatmul.mubr.bf16.gmra.mrb[4].mxu0 %v1661_v14  ;;  %1607 = vmatmul.mubr.bf16.gmra.mrb[4].mxu1 %v1677_v16 }
  0x2b   :  { %1578 = vmatprep.mubr.bf16.mxu0 %v1662_v15  ;;  %1610 = vmatprep.mubr.bf16.mxu1 %v1678_v17 }
  0x32   :  { %1579 = vmatmul.mubr.bf16.gmra.mrb[8].mxu0 %v1663_v18  ;;  %1611 = vmatmul.mubr.bf16.gmra.mrb[8].mxu1 %v1679_v19 }
  0x33   :  { %1582 = vmatprep.mubr.bf16.mxu0 %v1664_v20  ;;  %1614 = vmatprep.mubr.bf16.mxu1 %v1680_v21 }
  0x3a   :  { %1583 = vmatmul.mubr.bf16.gmra.mrb[12].mxu0 %v1665_v22  ;;  %1615 = vmatmul.mubr.bf16.gmra.mrb[12].mxu1 %v1681_v23 }
  0x3b   :  { %1586 = vmatprep.mubr.bf16.mxu0 %v1666_v24  ;;  %1618 = vmatprep.mubr.bf16.mxu1 %v1682_v25 }
  0x42   :  { %1587 = vmatmul.mubr.bf16.gmra.mrb[16].mxu0 %v1667_v26  ;;  %1619 = vmatmul.mubr.bf16.gmra.mrb[16].mxu1 %v1683_v27 }
  0x43   :  { %1590 = vmatprep.mubr.bf16.mxu0 %v1668_v28  ;;  %1622 = vmatprep.mubr.bf16.mxu1 %v1684_v29 }
  0x4a   :  { %1591 = vmatmul.mubr.bf16.gmra.mrb[20].mxu0 %v1669_v30  ;;  %1623 = vmatmul.mubr.bf16.gmra.mrb[20].mxu1 %v1685_v31 }
  0x4b   :  { %1594 = vmatprep.mubr.bf16.mxu0 %v1670_v32  ;;  %1626 = vmatprep.mubr.bf16.mxu1 %v1686_v33 }
  0x52   :  { %1595 = vmatmul.mubr.bf16.gmra.mrb[24].mxu0 %v1671_v34  ;;  %1627 = vmatmul.mubr.bf16.gmra.mrb[24].mxu1 %v1687_v35 }
  0x53   :  { %1598 = vmatprep.mubr.bf16.mxu0 %v1672_v36  ;;  %1630 = vmatprep.mubr.bf16.mxu1 %v1688_v37 }
  0x5a   :  { %1599 = vmatmul.mubr.bf16.gmra.mrb[28].mxu0 %v1673_v38  ;;  %1631 = vmatmul.mubr.bf16.gmra.mrb[28].mxu1 %v1689_v39 }
  0xf5   :  { %v1572_v40 = vpop.f32.mrb[0].mxu0  ;;  %v1830_v41 = vpop.f32.mrb[0].mxu1 }
  0xf6   :  { %v368_v42 = vpop.f32.mrb[1].mxu0  ;;  %v1832_v43 = vpop.f32.mrb[1].mxu1  ;;  %v1015_v55 = vmul.f32 %v1572_v40, %v1572_v40 }
  0xf7   :  { %v1573_v44 = vpop.f32.mrb[2].mxu0  ;;  %v1834_v45 = vpop.f32.mrb[2].mxu1  ;;  %v1013_v46 = vmul.f32 %v368_v42, %v368_v42 }
  0xf8   :  { %v1331_v47 = vpack.c.bf16 %v1573_v44, %v1572_v40  ;;  %v371_v48 = vpop.f32.mrb[3].mxu0  ;;  %v1411_v49 = vpack.c.bf16 %v1834_v45, %v1830_v41  ;;  %v1838_v50 = vpop.f32.mrb[3].mxu1  ;;  %v1016_v58 = vmul.f32 %v1573_v44, %v1573_v44 }
  0xf9   :  { %v1326_v51 = vpack.c.bf16 %v371_v48, %v368_v42  ;;  %v943_v52 = vadd.f32 %v371_v48, %v368_v42  ;;  %v1014_v53 = vmul.f32 %v371_v48, %v371_v48  ;;  %v1406_v54 = vpack.c.bf16 %v1838_v50, %v1832_v43 }
  0xfa   :  { %1483 = vst [vmem:[%s2126_s2 + $0x8] sm:$0xff] %v1331_v47   ;;  %1499 = vst [vmem:[%s2126_s2 + $0x88] sm:$0xff] %v1411_v49  }
  0xfb   :  { %1327 = vst [vmem:[%s2126_s2] sm:$0xff] %v1326_v51   ;;  %v944_v56 = vadd.f32 %v1572_v40, %v943_v52  ;;  %v1077_v57 = vadd.f32 %v1014_v53, %v1013_v46  ;;  %1498 = vst [vmem:[%s2126_s2 + $0x80] sm:$0xff] %v1406_v54  }
  0xfd   :  { %v1078_v59 = vadd.f32 %v1077_v57, %v1015_v55  ;;  %v1576_v60 = vpop.f32.mrb[4].mxu0  ;;  %v945_v61 = vadd.f32 %v1573_v44, %v944_v56  ;;  %v1854_v62 = vpop.f32.mrb[4].mxu1 }
  0xfe   :  { %v384_v63 = vpop.f32.mrb[5].mxu0  ;;  %v1856_v0 = vpop.f32.mrb[5].mxu1  ;;  %v1019_v15 = vmul.f32 %v1576_v60, %v1576_v60 }
  0xff   :  { %v946_v1 = vadd.f32 %v945_v61, %v384_v63  ;;  %v1017_v2 = vmul.f32 %v384_v63, %v384_v63  ;;  %v1079_v3 = vadd.f32 %v1078_v59, %v1016_v58  ;;  %v1577_v4 = vpop.f32.mrb[6].mxu0  ;;  %v1858_v5 = vpop.f32.mrb[6].mxu1 }
 0x100   :  { %v1341_v6 = vpack.c.bf16 %v1577_v4, %v1576_v60  ;;  %v387_v7 = vpop.f32.mrb[7].mxu0  ;;  %v1421_v8 = vpack.c.bf16 %v1858_v5, %v1854_v62  ;;  %v1862_v9 = vpop.f32.mrb[7].mxu1  ;;  %v1020_v18 = vmul.f32 %v1577_v4, %v1577_v4 }
 0x101   :  { %v1080_v10 = vadd.f32 %v1079_v3, %v1017_v2  ;;  %v1336_v11 = vpack.c.bf16 %v387_v7, %v384_v63  ;;  %v947_v12 = vadd.f32 %v946_v1, %v387_v7  ;;  %v1018_v13 = vmul.f32 %v387_v7, %v387_v7 }
 0x102   :  { %1485 = vst [vmem:[%s2126_s2 + $0x18] sm:$0xff] %v1341_v6   ;;  %1501 = vst [vmem:[%s2126_s2 + $0x98] sm:$0xff] %v1421_v8   ;;  %v1416_v14 = vpack.c.bf16 %v1862_v9, %v1856_v0 }
 0x103   :  { %1484 = vst [vmem:[%s2126_s2 + $0x10] sm:$0xff] %v1336_v11   ;;  %v948_v16 = vadd.f32 %v1576_v60, %v947_v12  ;;  %v1081_v17 = vadd.f32 %v1080_v10, %v1018_v13 }
 0x104   :  { %1500 = vst [vmem:[%s2126_s2 + $0x90] sm:$0xff] %v1416_v14  }
 0x105   :  { %v1082_v19 = vadd.f32 %v1081_v17, %v1019_v15  ;;  %v1580_v20 = vpop.f32.mrb[8].mxu0  ;;  %v949_v21 = vadd.f32 %v1577_v4, %v948_v16  ;;  %v1878_v22 = vpop.f32.mrb[8].mxu1 }
 0x106   :  { %v400_v23 = vpop.f32.mrb[9].mxu0  ;;  %v1880_v24 = vpop.f32.mrb[9].mxu1  ;;  %v1023_v39 = vmul.f32 %v1580_v20, %v1580_v20 }
 0x107   :  { %v950_v25 = vadd.f32 %v949_v21, %v400_v23  ;;  %v1021_v26 = vmul.f32 %v400_v23, %v400_v23  ;;  %v1083_v27 = vadd.f32 %v1082_v19, %v1020_v18  ;;  %v1581_v28 = vpop.f32.mrb[10].mxu0  ;;  %v1882_v29 = vpop.f32.mrb[10].mxu1 }
 0x108   :  { %v1351_v30 = vpack.c.bf16 %v1581_v28, %v1580_v20  ;;  %v403_v31 = vpop.f32.mrb[11].mxu0  ;;  %v1431_v32 = vpack.c.bf16 %v1882_v29, %v1878_v22  ;;  %v1886_v33 = vpop.f32.mrb[11].mxu1  ;;  %v1024_v44 = vmul.f32 %v1581_v28, %v1581_v28 }
 0x109   :  { %v1084_v34 = vadd.f32 %v1083_v27, %v1021_v26  ;;  %v1346_v35 = vpack.c.bf16 %v403_v31, %v400_v23  ;;  %v951_v36 = vadd.f32 %v950_v25, %v403_v31  ;;  %v1022_v37 = vmul.f32 %v403_v31, %v403_v31 }
 0x10a   :  { %1487 = vst [vmem:[%s2126_s2 + $0x28] sm:$0xff] %v1351_v30   ;;  %1503 = vst [vmem:[%s2126_s2 + $0xa8] sm:$0xff] %v1431_v32   ;;  %v1426_v38 = vpack.c.bf16 %v1886_v33, %v1880_v24 }
 0x10b   :  { %1486 = vst [vmem:[%s2126_s2 + $0x20] sm:$0xff] %v1346_v35   ;;  %v952_v40 = vadd.f32 %v1580_v20, %v951_v36  ;;  %v1085_v42 = vadd.f32 %v1084_v34, %v1022_v37 }
 0x10c   :  { %1502 = vst [vmem:[%s2126_s2 + $0xa0] sm:$0xff] %v1426_v38  }
 0x10d   :  { %v1086_v46 = vadd.f32 %v1085_v42, %v1023_v39  ;;  %v1584_v47 = vpop.f32.mrb[12].mxu0  ;;  %v953_v48 = vadd.f32 %v1581_v28, %v952_v40  ;;  %v1902_v49 = vpop.f32.mrb[12].mxu1 }
 0x10e   :  { %v416_v51 = vpop.f32.mrb[13].mxu0  ;;  %v1904_v52 = vpop.f32.mrb[13].mxu1  ;;  %v1027_v6 = vmul.f32 %v1584_v47, %v1584_v47 }
 0x10f   :  { %v954_v53 = vadd.f32 %v953_v48, %v416_v51  ;;  %v1025_v54 = vmul.f32 %v416_v51, %v416_v51  ;;  %v1087_v55 = vadd.f32 %v1086_v46, %v1024_v44  ;;  %v1585_v56 = vpop.f32.mrb[14].mxu0  ;;  %v1906_v57 = vpop.f32.mrb[14].mxu1 }
 0x110   :  { %v1361_v58 = vpack.c.bf16 %v1585_v56, %v1584_v47  ;;  %v419_v59 = vpop.f32.mrb[15].mxu0  ;;  %v1441_v60 = vpack.c.bf16 %v1906_v57, %v1902_v49  ;;  %v1910_v61 = vpop.f32.mrb[15].mxu1  ;;  %v1028_v10 = vmul.f32 %v1585_v56, %v1585_v56 }
 0x111   :  { %v1088_v63 = vadd.f32 %v1087_v55, %v1025_v54  ;;  %v1356_v1 = vpack.c.bf16 %v419_v59, %v416_v51  ;;  %v955_v2 = vadd.f32 %v954_v53, %v419_v59  ;;  %v1026_v3 = vmul.f32 %v419_v59, %v419_v59 }
 0x112   :  { %1489 = vst [vmem:[%s2126_s2 + $0x38] sm:$0xff] %v1361_v58   ;;  %1505 = vst [vmem:[%s2126_s2 + $0xb8] sm:$0xff] %v1441_v60   ;;  %v1436_v4 = vpack.c.bf16 %v1910_v61, %v1904_v52 }
 0x113   :  { %1488 = vst [vmem:[%s2126_s2 + $0x30] sm:$0xff] %v1356_v1   ;;  %v956_v7 = vadd.f32 %v1584_v47, %v955_v2  ;;  %v1089_v8 = vadd.f32 %v1088_v63, %v1026_v3 }
 0x114   :  { %1504 = vst [vmem:[%s2126_s2 + $0xb0] sm:$0xff] %v1436_v4  }
 0x115   :  { %v1090_v11 = vadd.f32 %v1089_v8, %v1027_v6  ;;  %v1588_v12 = vpop.f32.mrb[16].mxu0  ;;  %v957_v13 = vadd.f32 %v1585_v56, %v956_v7  ;;  %v1926_v14 = vpop.f32.mrb[16].mxu1 }
 0x116   :  { %v432_v15 = vpop.f32.mrb[17].mxu0  ;;  %v1928_v16 = vpop.f32.mrb[17].mxu1  ;;  %v1031_v35 = vmul.f32 %v1588_v12, %v1588_v12 }
 0x117   :  { %v958_v17 = vadd.f32 %v957_v13, %v432_v15  ;;  %v1029_v18 = vmul.f32 %v432_v15, %v432_v15  ;;  %v1091_v19 = vadd.f32 %v1090_v11, %v1028_v10  ;;  %v1589_v20 = vpop.f32.mrb[18].mxu0  ;;  %v1930_v21 = vpop.f32.mrb[18].mxu1 }
 0x118   :  { %v1371_v23 = vpack.c.bf16 %v1589_v20, %v1588_v12  ;;  %v435_v25 = vpop.f32.mrb[19].mxu0  ;;  %v1451_v26 = vpack.c.bf16 %v1930_v21, %v1926_v14  ;;  %v1934_v27 = vpop.f32.mrb[19].mxu1  ;;  %v1032_v38 = vmul.f32 %v1589_v20, %v1589_v20 }
 0x119   :  { %v1092_v28 = vadd.f32 %v1091_v19, %v1029_v18  ;;  %v1366_v30 = vpack.c.bf16 %v435_v25, %v432_v15  ;;  %v959_v31 = vadd.f32 %v958_v17, %v435_v25  ;;  %v1030_v32 = vmul.f32 %v435_v25, %v435_v25 }
 0x11a   :  { %1491 = vst [vmem:[%s2126_s2 + $0x48] sm:$0xff] %v1371_v23   ;;  %1507 = vst [vmem:[%s2126_s2 + $0xc8] sm:$0xff] %v1451_v26   ;;  %v1446_v34 = vpack.c.bf16 %v1934_v27, %v1928_v16 }
 0x11b   :  { %1490 = vst [vmem:[%s2126_s2 + $0x40] sm:$0xff] %v1366_v30   ;;  %v960_v36 = vadd.f32 %v1588_v12, %v959_v31  ;;  %v1093_v37 = vadd.f32 %v1092_v28, %v1030_v32 }
 0x11c   :  { %1506 = vst [vmem:[%s2126_s2 + $0xc0] sm:$0xff] %v1446_v34  }
 0x11d   :  { %v1094_v39 = vadd.f32 %v1093_v37, %v1031_v35  ;;  %v1592_v40 = vpop.f32.mrb[20].mxu0  ;;  %v961_v42 = vadd.f32 %v1589_v20, %v960_v36  ;;  %v1950_v44 = vpop.f32.mrb[20].mxu1 }
 0x11e   :  { %v448_v46 = vpop.f32.mrb[21].mxu0  ;;  %v1952_v47 = vpop.f32.mrb[21].mxu1  ;;  %v1035_v6 = vmul.f32 %v1592_v40, %v1592_v40 }
 0x11f   :  { %v962_v48 = vadd.f32 %v961_v42, %v448_v46  ;;  %v1033_v51 = vmul.f32 %v448_v46, %v448_v46  ;;  %v1095_v53 = vadd.f32 %v1094_v39, %v1032_v38  ;;  %v1593_v54 = vpop.f32.mrb[22].mxu0  ;;  %v1954_v55 = vpop.f32.mrb[22].mxu1 }
 0x120   :  { %v1381_v56 = vpack.c.bf16 %v1593_v54, %v1592_v40  ;;  %v451_v58 = vpop.f32.mrb[23].mxu0  ;;  %v1461_v59 = vpack.c.bf16 %v1954_v55, %v1950_v44  ;;  %v1958_v60 = vpop.f32.mrb[23].mxu1  ;;  %v1036_v10 = vmul.f32 %v1593_v54, %v1593_v54 }
 0x121   :  { %v1096_v63 = vadd.f32 %v1095_v53, %v1033_v51  ;;  %v1376_v1 = vpack.c.bf16 %v451_v58, %v448_v46  ;;  %v963_v2 = vadd.f32 %v962_v48, %v451_v58  ;;  %v1034_v3 = vmul.f32 %v451_v58, %v451_v58 }
 0x122   :  { %1493 = vst [vmem:[%s2126_s2 + $0x58] sm:$0xff] %v1381_v56   ;;  %1509 = vst [vmem:[%s2126_s2 + $0xd8] sm:$0xff] %v1461_v59   ;;  %v1456_v4 = vpack.c.bf16 %v1958_v60, %v1952_v47 }
 0x123   :  { %1492 = vst [vmem:[%s2126_s2 + $0x50] sm:$0xff] %v1376_v1   ;;  %v964_v7 = vadd.f32 %v1592_v40, %v963_v2  ;;  %v1097_v8 = vadd.f32 %v1096_v63, %v1034_v3 }
 0x124   :  { %1508 = vst [vmem:[%s2126_s2 + $0xd0] sm:$0xff] %v1456_v4  }
 0x125   :  { %v1098_v11 = vadd.f32 %v1097_v8, %v1035_v6  ;;  %v1596_v12 = vpop.f32.mrb[24].mxu0  ;;  %v965_v13 = vadd.f32 %v1593_v54, %v964_v7  ;;  %v1974_v15 = vpop.f32.mrb[24].mxu1 }
 0x126   :  { %v464_v17 = vpop.f32.mrb[25].mxu0  ;;  %v1976_v18 = vpop.f32.mrb[25].mxu1  ;;  %v1039_v39 = vmul.f32 %v1596_v12, %v1596_v12 }
 0x127   :  { %v966_v19 = vadd.f32 %v965_v13, %v464_v17  ;;  %v1037_v20 = vmul.f32 %v464_v17, %v464_v17  ;;  %v1099_v23 = vadd.f32 %v1098_v11, %v1036_v10  ;;  %v1597_v25 = vpop.f32.mrb[26].mxu0  ;;  %v1978_v26 = vpop.f32.mrb[26].mxu1 }
 0x128   :  { %v1391_v28 = vpack.c.bf16 %v1597_v25, %v1596_v12  ;;  %v467_v30 = vpop.f32.mrb[27].mxu0  ;;  %v1471_v31 = vpack.c.bf16 %v1978_v26, %v1974_v15  ;;  %v1982_v32 = vpop.f32.mrb[27].mxu1  ;;  %v1040_v46 = vmul.f32 %v1597_v25, %v1597_v25 }
 0x129   :  { %v1100_v34 = vadd.f32 %v1099_v23, %v1037_v20  ;;  %v1386_v35 = vpack.c.bf16 %v467_v30, %v464_v17  ;;  %v967_v36 = vadd.f32 %v966_v19, %v467_v30  ;;  %v1038_v37 = vmul.f32 %v467_v30, %v467_v30 }
 0x12a   :  { %1495 = vst [vmem:[%s2126_s2 + $0x68] sm:$0xff] %v1391_v28   ;;  %1511 = vst [vmem:[%s2126_s2 + $0xe8] sm:$0xff] %v1471_v31   ;;  %v1466_v38 = vpack.c.bf16 %v1982_v32, %v1976_v18  ;;  %v1045_v31 = vmul.f32 %v1832_v43, %v1832_v43 }
 0x12b   :  { %1494 = vst [vmem:[%s2126_s2 + $0x60] sm:$0xff] %v1386_v35   ;;  %v968_v40 = vadd.f32 %v1596_v12, %v967_v36  ;;  %v1101_v42 = vadd.f32 %v1100_v34, %v1038_v37 }
 0x12c   :  { %1510 = vst [vmem:[%s2126_s2 + $0xe0] sm:$0xff] %v1466_v38   ;;  %v1046_v38 = vmul.f32 %v1838_v50, %v1838_v50 }
 0x12d   :  { %v1102_v48 = vadd.f32 %v1101_v42, %v1039_v39  ;;  %v1600_v51 = vpop.f32.mrb[28].mxu0  ;;  %v969_v53 = vadd.f32 %v1597_v25, %v968_v40  ;;  %v1998_v54 = vpop.f32.mrb[28].mxu1  ;;  %v1047_v39 = vmul.f32 %v1830_v41, %v1830_v41 }
 0x12e   :  { %v480_v56 = vpop.f32.mrb[29].mxu0  ;;  %v2000_v58 = vpop.f32.mrb[29].mxu1  ;;  %v1043_v19 = vmul.f32 %v1600_v51, %v1600_v51 }
 0x12f   :  { %v970_v59 = vadd.f32 %v969_v53, %v480_v56  ;;  %v1041_v63 = vmul.f32 %v480_v56, %v480_v56  ;;  %v1103_v1 = vadd.f32 %v1102_v48, %v1040_v46  ;;  %v1601_v2 = vpop.f32.mrb[30].mxu0  ;;  %v2002_v3 = vpop.f32.mrb[30].mxu1  ;;  %v1048_v46 = vmul.f32 %v1834_v45, %v1834_v45 }
 0x130   :  { %v1401_v4 = vpack.c.bf16 %v1601_v2, %v1600_v51  ;;  %v483_v6 = vpop.f32.mrb[31].mxu0  ;;  %v1481_v7 = vpack.c.bf16 %v2002_v3, %v1998_v54  ;;  %v2006_v8 = vpop.f32.mrb[31].mxu1  ;;  %v1044_v25 = vmul.f32 %v1601_v2, %v1601_v2 }
 0x131   :  { %v1104_v10 = vadd.f32 %v1103_v1, %v1041_v63  ;;  %v1396_v11 = vpack.c.bf16 %v483_v6, %v480_v56  ;;  %v971_v12 = vadd.f32 %v970_v59, %v483_v6  ;;  %v1042_v13 = vmul.f32 %v483_v6, %v483_v6 }
 0x132   :  { %1497 = vst [vmem:[%s2126_s2 + $0x78] sm:$0xff] %v1401_v4   ;;  %1513 = vst [vmem:[%s2126_s2 + $0xf8] sm:$0xff] %v1481_v7   ;;  %v1476_v17 = vpack.c.bf16 %v2006_v8, %v2000_v58  ;;  %v1050_v63 = vmul.f32 %v1862_v9, %v1862_v9 }
 0x133   :  { %1496 = vst [vmem:[%s2126_s2 + $0x70] sm:$0xff] %v1396_v11   ;;  %v972_v20 = vadd.f32 %v1600_v51, %v971_v12  ;;  %v1105_v23 = vadd.f32 %v1104_v10, %v1042_v13  ;;  %v1054_v12 = vmul.f32 %v1886_v33, %v1886_v33 }
 0x134   :  { %1512 = vst [vmem:[%s2126_s2 + $0xf0] sm:$0xff] %v1476_v17  }
 0x135   :  { %v1106_v28 = vadd.f32 %v1105_v23, %v1043_v19  ;;  %v973_v30 = vadd.f32 %v1601_v2, %v972_v20 }
 0x137   :  { %v974_v34 = vadd.f32 %v973_v30, %v1832_v43  ;;  %v1107_v35 = vadd.f32 %v1106_v28, %v1044_v25  ;;  %v1049_v43 = vmul.f32 %v1856_v0, %v1856_v0  ;;  %v1058_v30 = vmul.f32 %v1910_v61, %v1910_v61 }
 0x139   :  { %v1108_v36 = vadd.f32 %v1107_v35, %v1045_v31  ;;  %v975_v37 = vadd.f32 %v974_v34, %v1838_v50 }
 0x13b   :  { %v976_v40 = vadd.f32 %v1830_v41, %v975_v37  ;;  %v1109_v42 = vadd.f32 %v1108_v36, %v1046_v38  ;;  %v1051_v41 = vmul.f32 %v1854_v62, %v1854_v62 }
 0x13d   :  { %v1110_v48 = vadd.f32 %v1109_v42, %v1047_v39  ;;  %v977_v51 = vadd.f32 %v1834_v45, %v976_v40  ;;  %v1052_v45 = vmul.f32 %v1858_v5, %v1858_v5  ;;  %v1062_v40 = vmul.f32 %v1934_v27, %v1934_v27 }
 0x13f   :  { %v978_v53 = vadd.f32 %v977_v51, %v1856_v0  ;;  %v1111_v56 = vadd.f32 %v1110_v48, %v1048_v46  ;;  %v1053_v0 = vmul.f32 %v1880_v24, %v1880_v24 }
 0x141   :  { %v1112_v59 = vadd.f32 %v1111_v56, %v1049_v43  ;;  %v979_v50 = vadd.f32 %v978_v53, %v1862_v9 }
 0x143   :  { %v980_v1 = vadd.f32 %v1854_v62, %v979_v50  ;;  %v1113_v2 = vadd.f32 %v1112_v59, %v1050_v63  ;;  %v1055_v62 = vmul.f32 %v1878_v22, %v1878_v22  ;;  %v1066_v59 = vmul.f32 %v1958_v60, %v1958_v60 }
 0x145   :  { %v1114_v4 = vadd.f32 %v1113_v2, %v1051_v41  ;;  %v981_v6 = vadd.f32 %v1858_v5, %v980_v1  ;;  %v1056_v5 = vmul.f32 %v1882_v29, %v1882_v29 }
 0x147   :  { %v982_v7 = vadd.f32 %v981_v6, %v1880_v24  ;;  %v1115_v10 = vadd.f32 %v1114_v4, %v1052_v45  ;;  %v1057_v24 = vmul.f32 %v1904_v52, %v1904_v52  ;;  %v1070_v6 = vmul.f32 %v1982_v32, %v1982_v32 }
 0x149   :  { %v1116_v11 = vadd.f32 %v1115_v10, %v1053_v0  ;;  %v983_v9 = vadd.f32 %v982_v7, %v1886_v33 }
 0x14b   :  { %v984_v13 = vadd.f32 %v1878_v22, %v983_v9  ;;  %v1117_v17 = vadd.f32 %v1116_v11, %v1054_v12  ;;  %v1059_v22 = vmul.f32 %v1902_v49, %v1902_v49 }
 0x14d   :  { %v1118_v19 = vadd.f32 %v1117_v17, %v1055_v62  ;;  %v985_v20 = vadd.f32 %v1882_v29, %v984_v13  ;;  %v1060_v29 = vmul.f32 %v1906_v57, %v1906_v57  ;;  %v1074_v13 = vmul.f32 %v2006_v8, %v2006_v8 }
 0x14f   :  { %v986_v23 = vadd.f32 %v985_v20, %v1904_v52  ;;  %v1119_v25 = vadd.f32 %v1118_v19, %v1056_v5  ;;  %v1061_v52 = vmul.f32 %v1928_v16, %v1928_v16 }
 0x151   :  { %v1120_v28 = vadd.f32 %v1119_v25, %v1057_v24  ;;  %v987_v33 = vadd.f32 %v986_v23, %v1910_v61 }
 0x153   :  { %v988_v31 = vadd.f32 %v1902_v49, %v987_v33  ;;  %v1121_v34 = vadd.f32 %v1120_v28, %v1058_v30  ;;  %v1063_v49 = vmul.f32 %v1926_v14, %v1926_v14 }
 0x155   :  { %v1122_v35 = vadd.f32 %v1121_v34, %v1059_v22  ;;  %v989_v36 = vadd.f32 %v1906_v57, %v988_v31  ;;  %v1064_v57 = vmul.f32 %v1930_v21, %v1930_v21 }
 0x157   :  { %v990_v37 = vadd.f32 %v989_v36, %v1928_v16  ;;  %v1123_v38 = vadd.f32 %v1122_v35, %v1060_v29  ;;  %v1065_v16 = vmul.f32 %v1952_v47, %v1952_v47 }
 0x159   :  { %v1124_v39 = vadd.f32 %v1123_v38, %v1061_v52  ;;  %v991_v61 = vadd.f32 %v990_v37, %v1934_v27 }
 0x15b   :  { %v992_v42 = vadd.f32 %v1926_v14, %v991_v61  ;;  %v1125_v46 = vadd.f32 %v1124_v39, %v1062_v40  ;;  %v1067_v14 = vmul.f32 %v1950_v44, %v1950_v44 }
 0x15d   :  { %v1126_v48 = vadd.f32 %v1125_v46, %v1063_v49  ;;  %v993_v51 = vadd.f32 %v1930_v21, %v992_v42  ;;  %v1068_v21 = vmul.f32 %v1954_v55, %v1954_v55 }
 0x15f   :  { %v994_v43 = vadd.f32 %v993_v51, %v1952_v47  ;;  %v1127_v53 = vadd.f32 %v1126_v48, %v1064_v57  ;;  %v1069_v47 = vmul.f32 %v1976_v18, %v1976_v18 }
 0x161   :  { %v1128_v56 = vadd.f32 %v1127_v53, %v1065_v16  ;;  %v995_v27 = vadd.f32 %v994_v43, %v1958_v60 }
 0x163   :  { %v996_v50 = vadd.f32 %v1950_v44, %v995_v27  ;;  %v1129_v63 = vadd.f32 %v1128_v56, %v1066_v59  ;;  %v1071_v44 = vmul.f32 %v1974_v15, %v1974_v15 }
 0x165   :  { %v1130_v41 = vadd.f32 %v1129_v63, %v1067_v14  ;;  %v997_v1 = vadd.f32 %v1954_v55, %v996_v50  ;;  %v1072_v55 = vmul.f32 %v1978_v26, %v1978_v26 }
 0x167   :  { %v998_v2 = vadd.f32 %v997_v1, %v1976_v18  ;;  %v1131_v45 = vadd.f32 %v1130_v41, %v1068_v21  ;;  %v1073_v18 = vmul.f32 %v2000_v58, %v2000_v58 }
 0x169   :  { %v1132_v4 = vadd.f32 %v1131_v45, %v1069_v47  ;;  %v999_v60 = vadd.f32 %v998_v2, %v1982_v32 }
 0x16b   :  { %v1000_v0 = vadd.f32 %v1974_v15, %v999_v60  ;;  %v1133_v7 = vadd.f32 %v1132_v4, %v1070_v6  ;;  %v1075_v15 = vmul.f32 %v1998_v54, %v1998_v54 }
 0x16d   :  { %v1134_v10 = vadd.f32 %v1133_v7, %v1071_v44  ;;  %v1001_v11 = vadd.f32 %v1978_v26, %v1000_v0  ;;  %v1076_v26 = vmul.f32 %v2002_v3, %v2002_v3 }
 0x16f   :  { %v1002_v9 = vadd.f32 %v1001_v11, %v2000_v58  ;;  %v1135_v12 = vadd.f32 %v1134_v10, %v1072_v55 }
 0x171   :  { %v1136_v62 = vadd.f32 %v1135_v12, %v1073_v18  ;;  %v1003_v32 = vadd.f32 %v1002_v9, %v2006_v8 }
 0x173   :  { %v1004_v17 = vadd.f32 %v1998_v54, %v1003_v32  ;;  %v1137_v5 = vadd.f32 %v1136_v62, %v1074_v13 }
 0x175   :  { %v1005_v19 = vadd.f32 %v2002_v3, %v1004_v17  ;;  %v1138_v20 = vadd.f32 %v1137_v5, %v1075_v15 }
 0x177   :  { %v1006_v58 = vrot.slane %v1005_v19, 4  ;;  %v1139_v24 = vadd.f32 %v1138_v20, %v1076_v26 }
 0x179   :  { %v1007_v23 = vadd.f32 %v1006_v58, %v1005_v19  ;;  %v1140_v25 = vrot.slane %v1139_v24, 4 }
 0x17b   :  { %v1008_v28 = vrot.slane %v1007_v23, 2  ;;  %v1141_v33 = vadd.f32 %v1140_v25, %v1139_v24 }
 0x17d   :  { %v1009_v30 = vadd.f32 %v1008_v28, %v1007_v23  ;;  %v1142_v8 = vrot.slane %v1141_v33, 2 }
 0x17f   :  { %v1010_v22 = vrot.slane %v1009_v30, 1  ;;  %v1143_v31 = vadd.f32 %v1142_v8, %v1141_v33 }
 0x181   :  { %v1011_v34 = vadd.f32 %v1010_v22, %v1009_v30  ;;  %v1144_v29 = vrot.slane %v1143_v31, 1 }
 0x183   :  { %1012 = vst [vmem:[%s2127_s3] sm:$0x1] %v1011_v34  ;;  %v1145_v54 = vadd.f32 %v1144_v29, %v1143_v31 }
 0x185   :  { %1146 = vst [vmem:[%s2127_s3 + $0x1] sm:$0x1] %v1145_v54 }

// kernel: discriminator_forward.6
= control target key start
LH: loop header
LB: loop body
LE: loop exit
PB: predicated region body
PF: predicated region fallthrough
CT: control target
= control target key end

     0   :  { %s878_s1 = inlined_call_operand.vmem [shape: bf16[256,128], index: 1, kind: input, shape index: {}]   ;;  %s879_s0 = inlined_call_operand.vmem [shape: bf16[128,256], index: 0, kind: input, shape index: {}]   ;;  %s880_s2 = inlined_call_operand.vmem [shape: bf16[128,128], index: 2, kind: output, shape index: {0}]   ;;  %s881_s3 = inlined_call_operand.vmem [shape: f32[1,2,128], index: 3, kind: output, shape index: {1}]  }
   0x1   :  { %v674_v0 = vld [vmem:[%s878_s1 + $0x40] sm:$0xff]   ;;  %v676_v2 = vld [vmem:[%s878_s1 + $0x48] sm:$0xff]   ;;  %v678_v4 = vld [vmem:[%s878_s1 + $0x50] sm:$0xff]  }
   0x2   :  { %v675_v1 = vld [vmem:[%s878_s1] sm:$0xff]   ;;  %594 = vmatprep.subr.bf16.mxu0 %v674_v0  ;;  %658 = vmatprep.subr.bf16.mxu1 %v674_v0  ;;  %v677_v3 = vld [vmem:[%s878_s1 + $0x8] sm:$0xff]   ;;  %v679_v5 = vld [vmem:[%s878_s1 + $0x10] sm:$0xff]  }
   0x3   :  { %595 = vmatpush3.bf16.msra.mxu0 %v675_v1  ;;  %666 = vmatpush3.bf16.msra.mxu1 %v675_v1  ;;  %v680_v6 = vld [vmem:[%s878_s1 + $0x58] sm:$0xff]   ;;  %v682_v8 = vld [vmem:[%s878_s1 + $0x60] sm:$0xff]   ;;  %v684_v10 = vld [vmem:[%s878_s1 + $0x68] sm:$0xff]  }
   0x4   :  { %596 = vmatprep.subr.bf16.mxu0 %v676_v2  ;;  %659 = vmatprep.subr.bf16.mxu1 %v676_v2  ;;  %v681_v7 = vld [vmem:[%s878_s1 + $0x18] sm:$0xff]   ;;  %v683_v9 = vld [vmem:[%s878_s1 + $0x20] sm:$0xff]   ;;  %v685_v12 = vld [vmem:[%s878_s1 + $0x28] sm:$0xff]  }
   0x5   :  { %v692_v11 = vld [vmem:[%s879_s0 + $0x4] ss:$8 sps:$4 sm:$0xff]   ;;  %v686_v14 = vld [vmem:[%s878_s1 + $0x70] sm:$0xff]   ;;  %v688_v16 = vld [vmem:[%s878_s1 + $0x78] sm:$0xff]  }
   0x6   :  { %v698_v13 = vld [vmem:[%s879_s0 + $0x44] ss:$8 sps:$4 sm:$0xff]   ;;  %270 = vmatprep.mubr.bf16.mxu0 %v692_v11  ;;  %v687_v15 = vld [vmem:[%s878_s1 + $0x30] sm:$0xff]   ;;  %v689_v17 = vld [vmem:[%s878_s1 + $0x38] sm:$0xff]  }
   0x7   :  { %597 = vmatpush3.bf16.msra.mxu0 %v677_v3  ;;  %667 = vmatpush3.bf16.msra.mxu1 %v677_v3  ;;  %v690_v18 = vld [vmem:[%s879_s0] ss:$8 sps:$4 sm:$0xff]   ;;  %v693_v20 = vld [vmem:[%s879_s0 + $0x14] ss:$8 sps:$4 sm:$0xff]   ;;  %v695_v22 = vld [vmem:[%s879_s0 + $0x10] ss:$8 sps:$4 sm:$0xff]  }
   0x8   :  { %598 = vmatprep.subr.bf16.mxu0 %v678_v4  ;;  %660 = vmatprep.subr.bf16.mxu1 %v678_v4  ;;  %v696_v19 = vld [vmem:[%s879_s0 + $0x40] ss:$8 sps:$4 sm:$0xff]   ;;  %v702_v21 = vld [vmem:[%s879_s0 + $0x54] ss:$8 sps:$4 sm:$0xff]   ;;  %v704_v23 = vld [vmem:[%s879_s0 + $0x50] ss:$8 sps:$4 sm:$0xff]  }
   0x9   :  { %302 = vmatprep.mubr.bf16.mxu1 %v698_v13  ;;  %v699_v24 = vld [vmem:[%s879_s0 + $0x24] ss:$8 sps:$4 sm:$0xff]   ;;  %v701_v26 = vld [vmem:[%s879_s0 + $0x20] ss:$8 sps:$4 sm:$0xff]   ;;  %v705_v28 = vld [vmem:[%s879_s0 + $0x34] ss:$8 sps:$4 sm:$0xff]  }
   0xa   :  { %v708_v25 = vld [vmem:[%s879_s0 + $0x64] ss:$8 sps:$4 sm:$0xff]   ;;  %v710_v27 = vld [vmem:[%s879_s0 + $0x60] ss:$8 sps:$4 sm:$0xff]   ;;  %v711_v29 = vld [vmem:[%s879_s0 + $0x74] ss:$8 sps:$4 sm:$0xff]  }
   0xb   :  { %599 = vmatpush3.bf16.msra.mxu0 %v679_v5  ;;  %668 = vmatpush3.bf16.msra.mxu1 %v679_v5  ;;  %v707_v30 = vld [vmem:[%s879_s0 + $0x30] ss:$8 sps:$4 sm:$0xff]  }
   0xc   :  { %600 = vmatprep.subr.bf16.mxu0 %v680_v6  ;;  %661 = vmatprep.subr.bf16.mxu1 %v680_v6  ;;  %v713_v31 = vld [vmem:[%s879_s0 + $0x70] ss:$8 sps:$4 sm:$0xff]  }
   0xf   :  { %601 = vmatpush3.bf16.msra.mxu0 %v681_v7  ;;  %669 = vmatpush3.bf16.msra.mxu1 %v681_v7 }
  0x10   :  { %602 = vmatprep.subr.bf16.mxu0 %v682_v8  ;;  %662 = vmatprep.subr.bf16.mxu1 %v682_v8 }
  0x13   :  { %603 = vmatpush3.bf16.msra.mxu0 %v683_v9  ;;  %670 = vmatpush3.bf16.msra.mxu1 %v683_v9 }
  0x14   :  { %604 = vmatprep.subr.bf16.mxu0 %v684_v10  ;;  %663 = vmatprep.subr.bf16.mxu1 %v684_v10 }
  0x17   :  { %605 = vmatpush3.bf16.msra.mxu0 %v685_v12  ;;  %671 = vmatpush3.bf16.msra.mxu1 %v685_v12 }
  0x18   :  { %606 = vmatprep.subr.bf16.mxu0 %v686_v14  ;;  %664 = vmatprep.subr.bf16.mxu1 %v686_v14 }
  0x1b   :  { %607 = vmatpush3.bf16.msra.mxu0 %v687_v15  ;;  %672 = vmatpush3.bf16.msra.mxu1 %v687_v15 }
  0x1c   :  { %608 = vmatprep.subr.bf16.mxu0 %v688_v16  ;;  %665 = vmatprep.subr.bf16.mxu1 %v688_v16 }
  0x1f   :  { %609 = vmatpush3.bf16.msra.mxu0 %v689_v17  ;;  %673 = vmatpush3.bf16.msra.mxu1 %v689_v17 }
  0x22   :  { %271 = vmatmul.mubr.bf16.vlgmr.msra.gmra.mrb[0].mxu0 %v690_v18  ;;  %303 = vmatmul.mubr.bf16.vlgmr.msra.gmra.mrb[0].mxu1 %v696_v19 }
  0x23   :  { %278 = vmatprep.mubr.bf16.mxu0 %v693_v20  ;;  %310 = vmatprep.mubr.bf16.mxu1 %v702_v21 }
  0x2a   :  { %279 = vmatmul.mubr.bf16.gmra.mrb[4].mxu0 %v695_v22  ;;  %311 = vmatmul.mubr.bf16.gmra.mrb[4].mxu1 %v704_v23 }
  0x2b   :  { %286 = vmatprep.mubr.bf16.mxu0 %v699_v24  ;;  %318 = vmatprep.mubr.bf16.mxu1 %v708_v25 }
  0x32   :  { %287 = vmatmul.mubr.bf16.gmra.mrb[8].mxu0 %v701_v26  ;;  %319 = vmatmul.mubr.bf16.gmra.mrb[8].mxu1 %v710_v27 }
  0x33   :  { %294 = vmatprep.mubr.bf16.mxu0 %v705_v28  ;;  %326 = vmatprep.mubr.bf16.mxu1 %v711_v29 }
  0x3a   :  { %295 = vmatmul.mubr.bf16.gmra.mrb[12].mxu0 %v707_v30  ;;  %327 = vmatmul.mubr.bf16.gmra.mrb[12].mxu1 %v713_v31 }
  0xf5   :  { %v610_v32 = vpop.f32.mrb[0].mxu0  ;;  %v634_v33 = vpop.f32.mrb[0].mxu1 }
  0xf6   :  { %v611_v34 = vpop.f32.mrb[1].mxu0  ;;  %v635_v35 = vpop.f32.mrb[1].mxu1 }
  0xf7   :  { %v612_v36 = vadd.f32 %v611_v34, %v610_v32  ;;  %v613_v37 = vpop.f32.mrb[2].mxu0  ;;  %v830_v38 = vadd.f32 %v635_v35, %v634_v33  ;;  %v637_v39 = vpop.f32.mrb[2].mxu1 }
  0xf8   :  { %v614_v40 = vpop.f32.mrb[3].mxu0  ;;  %v638_v41 = vpop.f32.mrb[3].mxu1 }
  0xf9   :  { %v615_v42 = vadd.f32 %v614_v40, %v613_v37  ;;  %v832_v43 = vadd.f32 %v638_v41, %v637_v39  ;;  %v437_v44 = vmul.f32 %v612_v36, %v612_v36 }
  0xfb   :  { %v550_v45 = vpack.c.bf16 %v615_v42, %v612_v36  ;;  %v415_v46 = vadd.f32 %v615_v42, %v612_v36  ;;  %v438_v47 = vmul.f32 %v615_v42, %v615_v42  ;;  %v570_v48 = vpack.c.bf16 %v832_v43, %v830_v38 }
  0xfd   :  { %551 = vst [vmem:[%s880_s2] sm:$0xff] %v550_v45   ;;  %v453_v49 = vadd.f32 %v438_v47, %v437_v44  ;;  %v616_v50 = vpop.f32.mrb[4].mxu0  ;;  %590 = vst [vmem:[%s880_s2 + $0x20] sm:$0xff] %v570_v48   ;;  %v640_v51 = vpop.f32.mrb[4].mxu1  ;;  %v445_v47 = vmul.f32 %v830_v38, %v830_v38 }
  0xfe   :  { %v617_v52 = vpop.f32.mrb[5].mxu0  ;;  %v641_v53 = vpop.f32.mrb[5].mxu1 }
  0xff   :  { %v618_v54 = vadd.f32 %v617_v52, %v616_v50  ;;  %v619_v55 = vpop.f32.mrb[6].mxu0  ;;  %v842_v56 = vadd.f32 %v641_v53, %v640_v51  ;;  %v643_v57 = vpop.f32.mrb[6].mxu1  ;;  %v446_v50 = vmul.f32 %v832_v43, %v832_v43 }
 0x100   :  { %v620_v58 = vpop.f32.mrb[7].mxu0  ;;  %v644_v59 = vpop.f32.mrb[7].mxu1 }
 0x101   :  { %v416_v60 = vadd.f32 %v618_v54, %v415_v46  ;;  %v439_v61 = vmul.f32 %v618_v54, %v618_v54  ;;  %v621_v62 = vadd.f32 %v620_v58, %v619_v55  ;;  %v645_v63 = vadd.f32 %v644_v59, %v643_v57 }
 0x102   :  { %v447_v53 = vmul.f32 %v842_v56, %v842_v56 }
 0x103   :  { %v454_v0 = vadd.f32 %v453_v49, %v439_v61  ;;  %v555_v1 = vpack.c.bf16 %v621_v62, %v618_v54  ;;  %v417_v2 = vadd.f32 %v621_v62, %v416_v60  ;;  %v440_v3 = vmul.f32 %v621_v62, %v621_v62 }
 0x104   :  { %v575_v4 = vpack.c.bf16 %v645_v63, %v842_v56  ;;  %v448_v57 = vmul.f32 %v645_v63, %v645_v63 }
 0x105   :  { %587 = vst [vmem:[%s880_s2 + $0x8] sm:$0xff] %v555_v1   ;;  %v455_v5 = vadd.f32 %v454_v0, %v440_v3  ;;  %v622_v6 = vpop.f32.mrb[8].mxu0  ;;  %v646_v7 = vpop.f32.mrb[8].mxu1 }
 0x106   :  { %v623_v8 = vpop.f32.mrb[9].mxu0  ;;  %591 = vst [vmem:[%s880_s2 + $0x28] sm:$0xff] %v575_v4   ;;  %v647_v9 = vpop.f32.mrb[9].mxu1 }
 0x107   :  { %v624_v10 = vadd.f32 %v623_v8, %v622_v6  ;;  %v625_v11 = vpop.f32.mrb[10].mxu0  ;;  %v648_v12 = vadd.f32 %v647_v9, %v646_v7  ;;  %v649_v13 = vpop.f32.mrb[10].mxu1 }
 0x108   :  { %v626_v14 = vpop.f32.mrb[11].mxu0  ;;  %v650_v15 = vpop.f32.mrb[11].mxu1 }
 0x109   :  { %v418_v16 = vadd.f32 %v624_v10, %v417_v2  ;;  %v441_v17 = vmul.f32 %v624_v10, %v624_v10  ;;  %v627_v18 = vadd.f32 %v626_v14, %v625_v11  ;;  %v651_v19 = vadd.f32 %v650_v15, %v649_v13 }
 0x10a   :  { %v449_v60 = vmul.f32 %v648_v12, %v648_v12 }
 0x10b   :  { %v456_v20 = vadd.f32 %v455_v5, %v441_v17  ;;  %v560_v21 = vpack.c.bf16 %v627_v18, %v624_v10  ;;  %v419_v22 = vadd.f32 %v627_v18, %v418_v16  ;;  %v442_v23 = vmul.f32 %v627_v18, %v627_v18 }
 0x10c   :  { %v580_v24 = vpack.c.bf16 %v651_v19, %v648_v12  ;;  %v450_v1 = vmul.f32 %v651_v19, %v651_v19 }
 0x10d   :  { %588 = vst [vmem:[%s880_s2 + $0x10] sm:$0xff] %v560_v21   ;;  %v457_v25 = vadd.f32 %v456_v20, %v442_v23  ;;  %v628_v26 = vpop.f32.mrb[12].mxu0  ;;  %v652_v27 = vpop.f32.mrb[12].mxu1 }
 0x10e   :  { %v629_v28 = vpop.f32.mrb[13].mxu0  ;;  %592 = vst [vmem:[%s880_s2 + $0x30] sm:$0xff] %v580_v24   ;;  %v653_v29 = vpop.f32.mrb[13].mxu1 }
 0x10f   :  { %v630_v30 = vadd.f32 %v629_v28, %v628_v26  ;;  %v631_v31 = vpop.f32.mrb[14].mxu0  ;;  %v654_v32 = vadd.f32 %v653_v29, %v652_v27  ;;  %v655_v33 = vpop.f32.mrb[14].mxu1 }
 0x110   :  { %v632_v34 = vpop.f32.mrb[15].mxu0  ;;  %v656_v35 = vpop.f32.mrb[15].mxu1 }
 0x111   :  { %v420_v36 = vadd.f32 %v630_v30, %v419_v22  ;;  %v443_v37 = vmul.f32 %v630_v30, %v630_v30  ;;  %v633_v39 = vadd.f32 %v632_v34, %v631_v31  ;;  %v657_v40 = vadd.f32 %v656_v35, %v655_v33 }
 0x112   :  { %v451_v2 = vmul.f32 %v654_v32, %v654_v32 }
 0x113   :  { %v458_v41 = vadd.f32 %v457_v25, %v443_v37  ;;  %v565_v42 = vpack.c.bf16 %v633_v39, %v630_v30  ;;  %v421_v44 = vadd.f32 %v633_v39, %v420_v36  ;;  %v444_v45 = vmul.f32 %v633_v39, %v633_v39 }
 0x114   :  { %v585_v46 = vpack.c.bf16 %v657_v40, %v654_v32  ;;  %v452_v6 = vmul.f32 %v657_v40, %v657_v40 }
 0x115   :  { %589 = vst [vmem:[%s880_s2 + $0x18] sm:$0xff] %v565_v42   ;;  %v422_v48 = vadd.f32 %v830_v38, %v421_v44  ;;  %v459_v49 = vadd.f32 %v458_v41, %v444_v45 }
 0x116   :  { %593 = vst [vmem:[%s880_s2 + $0x38] sm:$0xff] %v585_v46  }
 0x117   :  { %v423_v51 = vadd.f32 %v832_v43, %v422_v48  ;;  %v460_v52 = vadd.f32 %v459_v49, %v445_v47 }
 0x119   :  { %v461_v54 = vadd.f32 %v460_v52, %v446_v50  ;;  %v424_v55 = vadd.f32 %v842_v56, %v423_v51 }
 0x11b   :  { %v425_v58 = vadd.f32 %v645_v63, %v424_v55  ;;  %v462_v38 = vadd.f32 %v461_v54, %v447_v53 }
 0x11d   :  { %v426_v59 = vadd.f32 %v648_v12, %v425_v58  ;;  %v463_v61 = vadd.f32 %v462_v38, %v448_v57 }
 0x11f   :  { %v464_v62 = vadd.f32 %v463_v61, %v449_v60  ;;  %v427_v0 = vadd.f32 %v651_v19, %v426_v59 }
 0x121   :  { %v465_v3 = vadd.f32 %v464_v62, %v450_v1  ;;  %v428_v4 = vadd.f32 %v654_v32, %v427_v0 }
 0x123   :  { %v466_v43 = vadd.f32 %v465_v3, %v451_v2  ;;  %v429_v5 = vadd.f32 %v657_v40, %v428_v4 }
 0x125   :  { %v430_v7 = vrot.slane %v429_v5, 4  ;;  %v467_v8 = vadd.f32 %v466_v43, %v452_v6 }
 0x127   :  { %v431_v9 = vadd.f32 %v430_v7, %v429_v5  ;;  %v468_v10 = vrot.slane %v467_v8, 4 }
 0x129   :  { %v432_v56 = vrot.slane %v431_v9, 2  ;;  %v469_v11 = vadd.f32 %v468_v10, %v467_v8 }
 0x12b   :  { %v433_v63 = vadd.f32 %v432_v56, %v431_v9  ;;  %v470_v13 = vrot.slane %v469_v11, 2 }
 0x12d   :  { %v434_v14 = vrot.slane %v433_v63, 1  ;;  %v471_v12 = vadd.f32 %v470_v13, %v469_v11 }
 0x12f   :  { %v435_v15 = vadd.f32 %v434_v14, %v433_v63  ;;  %v472_v16 = vrot.slane %v471_v12, 1 }
 0x131   :  { %436 = vst [vmem:[%s881_s3] sm:$0x1] %v435_v15  ;;  %v473_v17 = vadd.f32 %v472_v16, %v471_v12 }
 0x133   :  { %474 = vst [vmem:[%s881_s3 + $0x1] sm:$0x1] %v473_v17 }

// kernel: discriminator_forward.7
= control target key start
LH: loop header
LB: loop body
LE: loop exit
PB: predicated region body
PF: predicated region fallthrough
CT: control target
= control target key end

     0   :  { %s779_s1 = inlined_call_operand.vmem [shape: bf16[512,128], index: 1, kind: input, shape index: {}]   ;;  %s780_s0 = inlined_call_operand.vmem [shape: bf16[32,512], index: 0, kind: input, shape index: {}]   ;;  %s781_s2 = inlined_call_operand.vmem [shape: bf16[32,128], index: 2, kind: output, shape index: {0}]   ;;  %s782_s3 = inlined_call_operand.vmem [shape: f32[1,2,128], index: 3, kind: output, shape index: {1}]  }
   0x1   :  { %v583_v0 = vld [vmem:[%s779_s1 + $0x40] sm:$0xff]   ;;  %v587_v4 = vld [vmem:[%s779_s1 + $0x48] sm:$0xff]   ;;  %v591_v8 = vld [vmem:[%s779_s1 + $0x50] sm:$0xff]  }
   0x2   :  { %v584_v1 = vld [vmem:[%s779_s1 + $0xc0] sm:$0xff]   ;;  %527 = vmatprep.subr.bf16.mxu0 %v583_v0  ;;  %v588_v5 = vld [vmem:[%s779_s1 + $0xc8] sm:$0xff]   ;;  %v592_v9 = vld [vmem:[%s779_s1 + $0xd0] sm:$0xff]  }
   0x3   :  { %v585_v2 = vld [vmem:[%s779_s1] sm:$0xff]   ;;  %555 = vmatprep.subr.bf16.mxu1 %v584_v1  ;;  %v589_v6 = vld [vmem:[%s779_s1 + $0x8] sm:$0xff]   ;;  %v593_v10 = vld [vmem:[%s779_s1 + $0x10] sm:$0xff]  }
   0x4   :  { %v586_v3 = vld [vmem:[%s779_s1 + $0x80] sm:$0xff]   ;;  %528 = vmatpush3.bf16.msra.mxu0 %v585_v2  ;;  %v590_v7 = vld [vmem:[%s779_s1 + $0x88] sm:$0xff]   ;;  %v594_v11 = vld [vmem:[%s779_s1 + $0x90] sm:$0xff]  }
   0x5   :  { %556 = vmatpush3.bf16.msra.mxu1 %v586_v3  ;;  %529 = vmatprep.subr.bf16.mxu0 %v587_v4  ;;  %v595_v12 = vld [vmem:[%s779_s1 + $0x58] sm:$0xff]   ;;  %v599_v16 = vld [vmem:[%s779_s1 + $0x60] sm:$0xff]   ;;  %v603_v20 = vld [vmem:[%s779_s1 + $0x68] sm:$0xff]  }
   0x6   :  { %557 = vmatprep.subr.bf16.mxu1 %v588_v5  ;;  %v596_v13 = vld [vmem:[%s779_s1 + $0xd8] sm:$0xff]   ;;  %v600_v17 = vld [vmem:[%s779_s1 + $0xe0] sm:$0xff]   ;;  %v604_v21 = vld [vmem:[%s779_s1 + $0xe8] sm:$0xff]  }
   0x7   :  { %v597_v14 = vld [vmem:[%s779_s1 + $0x18] sm:$0xff]   ;;  %v601_v18 = vld [vmem:[%s779_s1 + $0x20] sm:$0xff]   ;;  %v605_v22 = vld [vmem:[%s779_s1 + $0x28] sm:$0xff]  }
   0x8   :  { %530 = vmatpush3.bf16.msra.mxu0 %v589_v6  ;;  %v598_v15 = vld [vmem:[%s779_s1 + $0x98] sm:$0xff]   ;;  %v602_v19 = vld [vmem:[%s779_s1 + $0xa0] sm:$0xff]   ;;  %v606_v23 = vld [vmem:[%s779_s1 + $0xa8] sm:$0xff]  }
   0x9   :  { %558 = vmatpush3.bf16.msra.mxu1 %v590_v7  ;;  %531 = vmatprep.subr.bf16.mxu0 %v591_v8  ;;  %v607_v24 = vld [vmem:[%s779_s1 + $0x70] sm:$0xff]   ;;  %v611_v28 = vld [vmem:[%s779_s1 + $0x78] sm:$0xff]  }
   0xa   :  { %559 = vmatprep.subr.bf16.mxu1 %v592_v9  ;;  %v608_v25 = vld [vmem:[%s779_s1 + $0xf0] sm:$0xff]   ;;  %v612_v29 = vld [vmem:[%s779_s1 + $0xf8] sm:$0xff]  }
   0xb   :  { %v609_v26 = vld [vmem:[%s779_s1 + $0x30] sm:$0xff]   ;;  %v613_v30 = vld [vmem:[%s779_s1 + $0x38] sm:$0xff]  }
   0xc   :  { %532 = vmatpush3.bf16.msra.mxu0 %v593_v10  ;;  %v610_v27 = vld [vmem:[%s779_s1 + $0xb0] sm:$0xff]   ;;  %v614_v31 = vld [vmem:[%s779_s1 + $0xb8] sm:$0xff]  }
   0xd   :  { %560 = vmatpush3.bf16.msra.mxu1 %v594_v11  ;;  %533 = vmatprep.subr.bf16.mxu0 %v595_v12  ;;  %v615_v32 = vld [vmem:[%s780_s0] ss:$16 sps:$4 sm:$0xff]   ;;  %v617_v33 = vld [vmem:[%s780_s0 + $0x4] ss:$16 sps:$4 sm:$0xff]   ;;  %v618_v34 = vld [vmem:[%s780_s0 + $0x8] ss:$16 sps:$4 sm:$0xff]  }
   0xe   :  { %561 = vmatprep.subr.bf16.mxu1 %v596_v13  ;;  %v620_v35 = vld [vmem:[%s780_s0 + $0xc] ss:$16 sps:$4 sm:$0xff]   ;;  %350 = vmatprep.mubr.bf16.mxu0 %v617_v33  ;;  %v621_v36 = vld [vmem:[%s780_s0 + $0x24] ss:$16 sps:$4 sm:$0xff]   ;;  %v625_v38 = vld [vmem:[%s780_s0 + $0x20] ss:$16 sps:$4 sm:$0xff]  }
   0xf   :  { %399 = vmatprep.mubr.bf16.mxu1 %v620_v35  ;;  %v623_v37 = vld [vmem:[%s780_s0 + $0x2c] ss:$16 sps:$4 sm:$0xff]   ;;  %v626_v39 = vld [vmem:[%s780_s0 + $0x28] ss:$16 sps:$4 sm:$0xff]  }
  0x10   :  { %534 = vmatpush3.bf16.msra.mxu0 %v597_v14 }
  0x11   :  { %562 = vmatpush3.bf16.msra.mxu1 %v598_v15  ;;  %535 = vmatprep.subr.bf16.mxu0 %v599_v16 }
  0x12   :  { %563 = vmatprep.subr.bf16.mxu1 %v600_v17 }
  0x14   :  { %536 = vmatpush3.bf16.msra.mxu0 %v601_v18 }
  0x15   :  { %564 = vmatpush3.bf16.msra.mxu1 %v602_v19  ;;  %537 = vmatprep.subr.bf16.mxu0 %v603_v20 }
  0x16   :  { %565 = vmatprep.subr.bf16.mxu1 %v604_v21 }
  0x18   :  { %538 = vmatpush3.bf16.msra.mxu0 %v605_v22 }
  0x19   :  { %566 = vmatpush3.bf16.msra.mxu1 %v606_v23  ;;  %539 = vmatprep.subr.bf16.mxu0 %v607_v24 }
  0x1a   :  { %567 = vmatprep.subr.bf16.mxu1 %v608_v25 }
  0x1c   :  { %540 = vmatpush3.bf16.msra.mxu0 %v609_v26 }
  0x1d   :  { %568 = vmatpush3.bf16.msra.mxu1 %v610_v27  ;;  %541 = vmatprep.subr.bf16.mxu0 %v611_v28 }
  0x1e   :  { %569 = vmatprep.subr.bf16.mxu1 %v612_v29 }
  0x20   :  { %542 = vmatpush3.bf16.msra.mxu0 %v613_v30 }
  0x21   :  { %570 = vmatpush3.bf16.msra.mxu1 %v614_v31 }
  0x23   :  { %351 = vmatmul.mubr.bf16.vlgmr.msra.gmra.mrb[0].mxu0 %v615_v32 }
  0x24   :  { %400 = vmatmul.mubr.bf16.vlgmr.msra.gmra.mrb[0].mxu1 %v618_v34  ;;  %358 = vmatprep.mubr.bf16.mxu0 %v621_v36 }
  0x25   :  { %407 = vmatprep.mubr.bf16.mxu1 %v623_v37 }
  0x2b   :  { %359 = vmatmul.mubr.bf16.gmra.mrb[4].mxu0 %v625_v38 }
  0x2c   :  { %408 = vmatmul.mubr.bf16.gmra.mrb[4].mxu1 %v626_v39 }
  0xf6   :  { %v543_v40 = vpop.f32.mrb[0].mxu0 }
  0xf7   :  { %v571_v41 = vpop.f32.mrb[0].mxu1  ;;  %v544_v42 = vpop.f32.mrb[1].mxu0 }
  0xf8   :  { %v545_v43 = vadd.f32 %v544_v42, %v543_v40  ;;  %v572_v44 = vpop.f32.mrb[1].mxu1  ;;  %v546_v45 = vpop.f32.mrb[2].mxu0 }
  0xf9   :  { %v573_v46 = vadd.f32 %v572_v44, %v571_v41  ;;  %v574_v47 = vpop.f32.mrb[2].mxu1  ;;  %v547_v48 = vpop.f32.mrb[3].mxu0 }
  0xfa   :  { %v548_v49 = vadd.f32 %v547_v48, %v546_v45  ;;  %v575_v50 = vpop.f32.mrb[3].mxu1 }
  0xfb   :  { %v402_v51 = vadd.f32 %v573_v46, %v545_v43  ;;  %v576_v52 = vadd.f32 %v575_v50, %v574_v47 }
  0xfd   :  { %v405_v53 = vadd.f32 %v576_v52, %v548_v49  ;;  %v446_v55 = vmul.f32 %v402_v51, %v402_v51 }
  0xfe   :  { %v549_v54 = vpop.f32.mrb[4].mxu0 }
  0xff   :  { %v519_v56 = vpack.c.bf16 %v405_v53, %v402_v51  ;;  %v436_v57 = vadd.f32 %v405_v53, %v402_v51  ;;  %v447_v58 = vmul.f32 %v405_v53, %v405_v53  ;;  %v577_v59 = vpop.f32.mrb[4].mxu1  ;;  %v550_v60 = vpop.f32.mrb[5].mxu0 }
 0x100   :  { %v551_v61 = vadd.f32 %v550_v60, %v549_v54  ;;  %v578_v62 = vpop.f32.mrb[5].mxu1  ;;  %v552_v63 = vpop.f32.mrb[6].mxu0 }
 0x101   :  { %520 = vst [vmem:[%s781_s2] sm:$0xff] %v519_v56   ;;  %v450_v0 = vadd.f32 %v447_v58, %v446_v55  ;;  %v579_v1 = vadd.f32 %v578_v62, %v577_v59  ;;  %v580_v2 = vpop.f32.mrb[6].mxu1  ;;  %v553_v3 = vpop.f32.mrb[7].mxu0 }
 0x102   :  { %v554_v4 = vadd.f32 %v553_v3, %v552_v63  ;;  %v581_v5 = vpop.f32.mrb[7].mxu1 }
 0x103   :  { %v410_v6 = vadd.f32 %v579_v1, %v551_v61  ;;  %v582_v7 = vadd.f32 %v581_v5, %v580_v2 }
 0x105   :  { %v437_v8 = vadd.f32 %v436_v57, %v410_v6  ;;  %v448_v9 = vmul.f32 %v410_v6, %v410_v6  ;;  %v413_v10 = vadd.f32 %v582_v7, %v554_v4 }
 0x107   :  { %v451_v11 = vadd.f32 %v450_v0, %v448_v9  ;;  %v524_v12 = vpack.c.bf16 %v413_v10, %v410_v6  ;;  %v438_v13 = vadd.f32 %v437_v8, %v413_v10  ;;  %v449_v14 = vmul.f32 %v413_v10, %v413_v10 }
 0x109   :  { %526 = vst [vmem:[%s781_s2 + $0x8] sm:$0xff] %v524_v12   ;;  %v439_v15 = vrot.slane %v438_v13, 4  ;;  %v452_v16 = vadd.f32 %v451_v11, %v449_v14 }
 0x10b   :  { %v440_v17 = vadd.f32 %v439_v15, %v438_v13  ;;  %v453_v18 = vrot.slane %v452_v16, 4 }
 0x10d   :  { %v441_v19 = vrot.slane %v440_v17, 2  ;;  %v454_v20 = vadd.f32 %v453_v18, %v452_v16 }
 0x10f   :  { %v442_v21 = vadd.f32 %v441_v19, %v440_v17  ;;  %v455_v22 = vrot.slane %v454_v20, 2 }
 0x111   :  { %v443_v23 = vrot.slane %v442_v21, 1  ;;  %v456_v24 = vadd.f32 %v455_v22, %v454_v20 }
 0x113   :  { %v444_v25 = vadd.f32 %v443_v23, %v442_v21  ;;  %v457_v26 = vrot.slane %v456_v24, 1 }
 0x115   :  { %445 = vst [vmem:[%s782_s3] sm:$0x1] %v444_v25  ;;  %v458_v27 = vadd.f32 %v457_v26, %v456_v24 }
 0x117   :  { %459 = vst [vmem:[%s782_s3 + $0x1] sm:$0x1] %v458_v27 }

</bundles_post_ra>
